<compile_context>
chip_gen: v7x
topology: tpu7x:2x2x1
jax: 0.10.0
libtpu: 0.0.40
codegen_flags: <defaults>
</compile_context>

<pallas_src>
import math
import jax
import jax.numpy as jnp
import numpy as np
from jax.experimental import pallas as pl
from jax.experimental.pallas import tpu as pltpu

# ----------------------------- configuration -----------------------------
B = 2                     # batch
C = 3                     # RGB
IMG = 16                  # input spatial size (== model resolution here)
P = 8                     # patch size
GRID = IMG // P
N_TOK = GRID * GRID + 1   # + class token  (= 5)
N_PAD = 8                 # tokens padded to a sublane multiple
D = 128                   # transformer width
HEADS = 2
HEAD_DIM = D // HEADS     # 64
HDP = 128                 # per-head lane-padded width (multiple of 128)
DP = HEADS * HDP          # padded per-Q/K/V width (256)
MLP = 4 * D
LAYERS = 2
EPS = 1e-5
CPP = C * P * P

MEAN = jnp.array([0.48145466, 0.4578275, 0.40821073], jnp.float32)
STD = jnp.array([0.26862954, 0.26130258, 0.27577711], jnp.float32)


def _gelu_exact(x):
    """Exact (erf) GELU via Abramowitz-Stegun 7.1.26 polynomial, |err| < 1.5e-7.

    Avoids relying on a lax.erf lowering inside the kernel; uses only VPU ops
    plus one EUP exp.
    """
    z = x * 0.7071067811865476          # x / sqrt(2)
    a = jnp.abs(z)
    t = 1.0 / (1.0 + 0.3275911 * a)
    poly = t * (0.254829592 + t * (-0.284496736 + t * (1.421413741
               + t * (-1.453152027 + t * 1.061405429))))
    erf_abs = 1.0 - poly * jnp.exp(-a * a)
    erf = jnp.where(z >= 0.0, erf_abs, -erf_abs)
    return 0.5 * x * (1.0 + erf)


# ------------------------------ Pallas kernel ------------------------------
def _vit_kernel(pat_ref, wemb_ref, biasrows_ref, lnpre_g_ref, lnpre_b_ref,
                kmask_ref,
                ln1g, ln1b, wqkv, bqkv, wo, bo, ln2g, ln2b, w1, b1, w2, b2,
                o_ref):
    layer = pl.program_id(0)

    def ln(v, g, bb):
        mu = jnp.mean(v, axis=-1, keepdims=True)
        var = jnp.mean((v - mu) ** 2, axis=-1, keepdims=True)
        return (v - mu) * jax.lax.rsqrt(var + EPS) * g + bb

    # ---- layer 0: patch embedding (+cls+pos, preprocess folded) + ln_pre ----
    @pl.when(layer == 0)
    def _():
        tok = jnp.dot(pat_ref[...], wemb_ref[...],
                      preferred_element_type=jnp.float32)
        tok = tok.reshape(B, N_PAD, D) + biasrows_ref[...][None]
        o_ref[...] = ln(tok, lnpre_g_ref[...], lnpre_b_ref[...])

    x = o_ref[...].reshape(B * N_PAD, D)          # resident across layers, fp32

    # precomputed additive key mask for padded token columns: (1, 1, N_PAD)
    kmask = kmask_ref[...].reshape(1, 1, N_PAD)

    # ------------------- multi-head self attention (pre-LN) -----------------
    h = ln(x, ln1g[0], ln1b[0]).astype(jnp.bfloat16)
    # QKV weight is head-padded: [Q_h0|Q_h1 | K_h0|K_h1 | V_h0|V_h1], each
    # head slab HDP=128 lanes wide (zero-padded), so all slices below are
    # lane-aligned.  1/sqrt(head_dim) is folded into the Q columns on host.
    qkv = jnp.dot(h, wqkv[0], preferred_element_type=jnp.float32) + bqkv[0]
    qkv3 = qkv.reshape(B, N_PAD, 3 * DP)
    wo0 = wo[0]                                   # (DP, D) bf16, head-padded rows

    attn = jnp.zeros((B * N_PAD, D), jnp.float32)
    for hh in range(HEADS):                       # static unroll (2 heads)
        lo = hh * HDP
        q = qkv3[:, :, lo:lo + HDP].astype(jnp.bfloat16)
        k = qkv3[:, :, DP + lo:DP + lo + HDP].astype(jnp.bfloat16)
        v = qkv3[:, :, 2 * DP + lo:2 * DP + lo + HDP].astype(jnp.bfloat16)
        s = jnp.einsum("bqd,bkd->bqk", q, k,
                       preferred_element_type=jnp.float32) + kmask
        s = s - jnp.max(s, axis=-1, keepdims=True)
        p = jnp.exp(s)
        p = p * pl.reciprocal(jnp.sum(p, axis=-1, keepdims=True), approx=True)
        ctx = jnp.einsum("bqk,bkd->bqd", p.astype(jnp.bfloat16), v,
                         preferred_element_type=jnp.float32)
        # accumulate the output projection per head (no ctx scratch / masked
        # partial stores); padded ctx lanes are zero so they contribute nothing.
        attn = attn + jnp.dot(ctx.reshape(B * N_PAD, HDP).astype(jnp.bfloat16),
                              wo0[lo:lo + HDP, :],
                              preferred_element_type=jnp.float32)
    x = x + attn + bo[0]

    # --------------------------------- MLP ----------------------------------
    h2 = ln(x, ln2g[0], ln2b[0]).astype(jnp.bfloat16)
    m = jnp.dot(h2, w1[0], preferred_element_type=jnp.float32) + b1[0]
    m = _gelu_exact(m)                             # exact GELU, fp32
    m = jnp.dot(m.astype(jnp.bfloat16), w2[0],
                preferred_element_type=jnp.float32) + b2[0]
    x = x + m

    o_ref[...] = x.reshape(B, N_PAD, D)


# ------------------------------ host wrappers ------------------------------
def prepare_embed_inputs(image, p):
    """Patchify (pure layout) + fold preprocess normalization into the patch
    embedding weight/bias; build padded token-row bias (cls + pos)."""
    # TODO(synk): kornia bicubic antialias resize to (224,224); with the input
    # already at model resolution the align_corners=True resize is identity.
    b = image.shape[0]
    patches = image.reshape(b, C, GRID, P, GRID, P).transpose(0, 2, 4, 1, 3, 5)
    patches = patches.reshape(b, GRID * GRID, CPP)
    pat_pad = jnp.zeros((b, N_PAD, CPP), jnp.float32)
    pat_pad = pat_pad.at[:, 1:N_TOK, :].set(patches)     # row 0 = cls slot, tail = pad
    pat2d = pat_pad.reshape(b * N_PAD, CPP)

    # preprocess: x_norm = x * (0.5/std) + (0.5-mean)/std, folded into conv
    scale_cpp = jnp.repeat(0.5 / STD, P * P)             # (CPP,), (c, ph, pw) order
    shift_cpp = jnp.repeat((0.5 - MEAN) / STD, P * P)
    w_flat = p["conv_w"].reshape(D, CPP).T               # (CPP, D)
    w_emb = w_flat * scale_cpp[:, None]
    emb_bias = shift_cpp @ w_flat                        # (D,)

    bias_rows = jnp.zeros((N_PAD, D), jnp.float32)       # (N_PAD, D), bcast in-kernel
    bias_rows = bias_rows.at[0].set(p["cls"] + p["pos"][0])
    bias_rows = bias_rows.at[1:N_TOK].set(emb_bias[None, :] + p["pos"][1:])
    return pat2d, w_emb, bias_rows


def pack_layer_params(p):
    """Fold the Q scale into the QKV weights and lane-pad every head's Q/K/V
    slab (and the matching Wo rows) to HDP=128 so in-kernel slices are
    lane-aligned full-vreg slabs."""
    scale = 1.0 / math.sqrt(HEAD_DIM)
    wqkv = p["wqkv"].at[:, :D, :].multiply(scale)        # fold q-scale into weights
    bqkv = p["bqkv"].at[:, :D].multiply(scale)
    wqkv_t = jnp.swapaxes(wqkv, 1, 2)                    # (L, D, 3D)
    wo_t = jnp.swapaxes(p["wo"], 1, 2)                   # (L, D, D)

    wqkv_p = jnp.zeros((LAYERS, D, 3 * DP), jnp.float32)
    bqkv_p = jnp.zeros((LAYERS, 1, 3 * DP), jnp.float32)
    wo_p = jnp.zeros((LAYERS, DP, D), jnp.float32)
    for h in range(HEADS):
        src = h * HEAD_DIM
        dst = h * HDP
        for part in range(3):                            # q, k, v blocks
            wqkv_p = wqkv_p.at[:, :, part * DP + dst:part * DP + dst + HEAD_DIM].set(
                wqkv_t[:, :, part * D + src:part * D + src + HEAD_DIM])
            bqkv_p = bqkv_p.at[:, 0, part * DP + dst:part * DP + dst + HEAD_DIM].set(
                bqkv[:, part * D + src:part * D + src + HEAD_DIM])
        wo_p = wo_p.at[:, dst:dst + HEAD_DIM, :].set(wo_t[:, src:src + HEAD_DIM, :])

    bf = jnp.bfloat16
    return {
        "ln1_g": p["ln1_g"].reshape(LAYERS, 1, D),
        "ln1_b": p["ln1_b"].reshape(LAYERS, 1, D),
        "wqkv_p": wqkv_p.astype(bf),                     # [L, D, 3*DP] bf16
        "bqkv_p": bqkv_p,                                # [L, 1, 3*DP] f32
        "wo_p": wo_p.astype(bf),                         # [L, DP, D]  bf16
        "bo": p["bo"].reshape(LAYERS, 1, D),
        "ln2_g": p["ln2_g"].reshape(LAYERS, 1, D),
        "ln2_b": p["ln2_b"].reshape(LAYERS, 1, D),
        "w1_t": jnp.swapaxes(p["w1"], 1, 2).astype(bf),  # [L, D, MLP] bf16
        "b1": p["b1"].reshape(LAYERS, 1, MLP),
        "w2_t": jnp.swapaxes(p["w2"], 1, 2).astype(bf),  # [L, MLP, D] bf16
        "b2": p["b2"].reshape(LAYERS, 1, D),
    }


def forward(image, params):
    pat2d, w_emb, bias_rows = prepare_embed_inputs(image, params)
    lp = pack_layer_params(params)
    lnpg = params["ln_pre_g"].reshape(1, D)
    lnpb = params["ln_pre_b"].reshape(1, D)
    # hoisted additive key mask for padded token columns
    kmask = jnp.where(jnp.arange(N_PAD) >= N_TOK, -1e30, 0.0)
    kmask = kmask.astype(jnp.float32).reshape(1, N_PAD)

    const2 = lambda l: (0, 0)
    const3 = lambda l: (0, 0, 0)
    perlay = lambda l: (l, 0, 0)

    in_specs = [
        pl.BlockSpec((B * N_PAD, CPP), const2),   # padded raw patches
        pl.BlockSpec((CPP, D), const2),           # embed weight (preproc folded)
        pl.BlockSpec((N_PAD, D), const2),         # token-row bias (cls/pos/shift)
        pl.BlockSpec((1, D), const2),             # ln_pre gamma
        pl.BlockSpec((1, D), const2),             # ln_pre beta
        pl.BlockSpec((1, N_PAD), const2),         # additive key mask
        pl.BlockSpec((1, 1, D), perlay),          # ln1 gamma
        pl.BlockSpec((1, 1, D), perlay),          # ln1 beta
        pl.BlockSpec((1, D, 3 * DP), perlay),     # qkv weight (bf16, head-padded)
        pl.BlockSpec((1, 1, 3 * DP), perlay),     # qkv bias (head-padded)
        pl.BlockSpec((1, DP, D), perlay),         # out-proj weight (bf16, head-padded)
        pl.BlockSpec((1, 1, D), perlay),          # out-proj bias
        pl.BlockSpec((1, 1, D), perlay),          # ln2 gamma
        pl.BlockSpec((1, 1, D), perlay),          # ln2 beta
        pl.BlockSpec((1, D, MLP), perlay),        # fc1 weight (bf16)
        pl.BlockSpec((1, 1, MLP), perlay),        # fc1 bias
        pl.BlockSpec((1, MLP, D), perlay),        # fc2 weight (bf16)
        pl.BlockSpec((1, 1, D), perlay),          # fc2 bias
    ]

    out = pl.pallas_call(
        _vit_kernel,
        grid=(LAYERS,),
        in_specs=in_specs,
        out_specs=pl.BlockSpec((B, N_PAD, D), const3),
        out_shape=jax.ShapeDtypeStruct((B, N_PAD, D), jnp.float32),
        compiler_params=pltpu.CompilerParams(
            dimension_semantics=("arbitrary",),
            vmem_limit_bytes=32 * 1024 * 1024),
    )(pat2d, w_emb, bias_rows, lnpg, lnpb, kmask,
      lp["ln1_g"], lp["ln1_b"], lp["wqkv_p"], lp["bqkv_p"], lp["wo_p"], lp["bo"],
      lp["ln2_g"], lp["ln2_b"], lp["w1_t"], lp["b1"], lp["w2_t"], lp["b2"])
    return out[:, :N_TOK, :]


# --------------------------- pure JAX reference ---------------------------
def reference_forward(image, p):
    x = ((image + 1.0) / 2.0 - MEAN.reshape(1, 3, 1, 1)) / STD.reshape(1, 3, 1, 1)
    b = x.shape[0]
    patches = x.reshape(b, C, GRID, P, GRID, P).transpose(0, 2, 4, 1, 3, 5)
    patches = patches.reshape(b, GRID * GRID, CPP)
    emb = patches @ p["conv_w"].reshape(D, -1).T
    cls = jnp.broadcast_to(p["cls"], (b, 1, D))
    x = jnp.concatenate([cls, emb], axis=1) + p["pos"][None]

    def ln(v, g, bb):
        mu = v.mean(-1, keepdims=True)
        var = ((v - mu) ** 2).mean(-1, keepdims=True)
        return (v - mu) / jnp.sqrt(var + EPS) * g + bb

    x = ln(x, p["ln_pre_g"], p["ln_pre_b"])
    for l in range(LAYERS):
        h = ln(x, p["ln1_g"][l], p["ln1_b"][l])
        qkv = h @ p["wqkv"][l].T + p["bqkv"][l]
        q, k, v = jnp.split(qkv, 3, axis=-1)
        q = q.reshape(b, N_TOK, HEADS, HEAD_DIM).transpose(0, 2, 1, 3)
        k = k.reshape(b, N_TOK, HEADS, HEAD_DIM).transpose(0, 2, 1, 3)
        v = v.reshape(b, N_TOK, HEADS, HEAD_DIM).transpose(0, 2, 1, 3)
        s = jnp.einsum("bhqd,bhkd->bhqk", q, k) / math.sqrt(HEAD_DIM)
        a = jax.nn.softmax(s, axis=-1)
        ctx = jnp.einsum("bhqk,bhkd->bhqd", a, v).transpose(0, 2, 1, 3)
        ctx = ctx.reshape(b, N_TOK, D)
        x = x + ctx @ p["wo"][l].T + p["bo"][l]
        h2 = ln(x, p["ln2_g"][l], p["ln2_b"][l])
        m = jax.nn.gelu(h2 @ p["w1"][l].T + p["b1"][l], approximate=False)
        x = x + m @ p["w2"][l].T + p["b2"][l]
    return x


# ------------------------------- params ----------------------------------
def init_params(key):
    ks = jax.random.split(key, 17)

    def nrm(k, shape, s=0.02):
        return jax.random.normal(k, shape, jnp.float32) * s

    return {
        "conv_w": nrm(ks[0], (D, C, P, P)),
        "cls": nrm(ks[1], (D,)),
        "pos": nrm(ks[2], (N_TOK, D)),
        "ln_pre_g": 1.0 + nrm(ks[3], (D,), 0.01),
        "ln_pre_b": nrm(ks[4], (D,), 0.01),
        "ln1_g": 1.0 + nrm(ks[5], (LAYERS, D), 0.01),
        "ln1_b": nrm(ks[6], (LAYERS, D), 0.01),
        "wqkv": nrm(ks[7], (LAYERS, 3 * D, D)),
        "bqkv": nrm(ks[8], (LAYERS, 3 * D), 0.01),
        "wo": nrm(ks[9], (LAYERS, D, D)),
        "bo": nrm(ks[10], (LAYERS, D), 0.01),
        "ln2_g": 1.0 + nrm(ks[11], (LAYERS, D), 0.01),
        "ln2_b": nrm(ks[12], (LAYERS, D), 0.01),
        "w1": nrm(ks[13], (LAYERS, MLP, D)),
        "b1": nrm(ks[14], (LAYERS, MLP), 0.01),
        "w2": nrm(ks[15], (LAYERS, D, MLP)),
        "b2": nrm(ks[16], (LAYERS, D), 0.01),
    }


if __name__ == "__main__":
    key = jax.random.PRNGKey(0)
    pkey, xkey = jax.random.split(key)
    params = init_params(pkey)
    image = jax.random.uniform(xkey, (B, C, IMG, IMG), jnp.float32,
                               minval=-1.0, maxval=1.0)

    out = forward(image, params)
    out = jax.block_until_ready(out)

    ref = reference_forward(image, params)
    assert out.shape == (B, N_TOK, D)
    # bf16 matmul inputs + approx reciprocal in softmax -> compare to fp32
    # reference with a correspondingly relaxed tolerance.
    np.testing.assert_allclose(np.asarray(out), np.asarray(ref),
                               rtol=3e-2, atol=3e-2)
    print("KERNEL_OK")
</pallas_src>

<mosaic_0001>
module attributes {stable_mosaic.version = 11 : i64} {
  func.func @_vit_kernel(%arg0: i32, %arg1: memref<16x192xf32, #tpu.memory_space<vmem>>, %arg2: memref<192x128xf32, #tpu.memory_space<vmem>>, %arg3: memref<8x128xf32, #tpu.memory_space<vmem>>, %arg4: memref<1x128xf32, #tpu.memory_space<vmem>>, %arg5: memref<1x128xf32, #tpu.memory_space<vmem>>, %arg6: memref<1x8xf32, #tpu.memory_space<vmem>>, %arg7: memref<1x1x128xf32, #tpu.memory_space<vmem>>, %arg8: memref<1x1x128xf32, #tpu.memory_space<vmem>>, %arg9: memref<1x128x768xbf16, #tpu.memory_space<vmem>>, %arg10: memref<1x1x768xf32, #tpu.memory_space<vmem>>, %arg11: memref<1x256x128xbf16, #tpu.memory_space<vmem>>, %arg12: memref<1x1x128xf32, #tpu.memory_space<vmem>>, %arg13: memref<1x1x128xf32, #tpu.memory_space<vmem>>, %arg14: memref<1x1x128xf32, #tpu.memory_space<vmem>>, %arg15: memref<1x128x512xbf16, #tpu.memory_space<vmem>>, %arg16: memref<1x1x512xf32, #tpu.memory_space<vmem>>, %arg17: memref<1x512x128xbf16, #tpu.memory_space<vmem>>, %arg18: memref<1x1x128xf32, #tpu.memory_space<vmem>>, %arg19: memref<2x8x128xf32, #tpu.memory_space<vmem>>) attributes {dimension_semantics = [#tpu.dimension_semantics<arbitrary>], iteration_bounds = array<i64: 2>, scalar_prefetch = 0 : i64, scratch_operands = 0 : i64, tpu.core_type = #tpu.core_type<tc>, window_params = [{pipeline_mode = #tpu.pipeline_mode<synchronous>, transform_indices = @transform_0, window_bounds = array<i64: 16, 192>}, {pipeline_mode = #tpu.pipeline_mode<synchronous>, transform_indices = @transform_1, window_bounds = array<i64: 192, 128>}, {pipeline_mode = #tpu.pipeline_mode<synchronous>, transform_indices = @transform_2, window_bounds = array<i64: 8, 128>}, {pipeline_mode = #tpu.pipeline_mode<synchronous>, transform_indices = @transform_3, window_bounds = array<i64: 1, 128>}, {pipeline_mode = #tpu.pipeline_mode<synchronous>, transform_indices = @transform_4, window_bounds = array<i64: 1, 128>}, {pipeline_mode = #tpu.pipeline_mode<synchronous>, transform_indices = @transform_5, window_bounds = array<i64: 1, 8>}, {transform_indices = @transform_6, window_bounds = array<i64: 1, 1, 128>}, {transform_indices = @transform_7, window_bounds = array<i64: 1, 1, 128>}, {transform_indices = @transform_8, window_bounds = array<i64: 1, 128, 768>}, {transform_indices = @transform_9, window_bounds = array<i64: 1, 1, 768>}, {transform_indices = @transform_10, window_bounds = array<i64: 1, 256, 128>}, {transform_indices = @transform_11, window_bounds = array<i64: 1, 1, 128>}, {transform_indices = @transform_12, window_bounds = array<i64: 1, 1, 128>}, {transform_indices = @transform_13, window_bounds = array<i64: 1, 1, 128>}, {transform_indices = @transform_14, window_bounds = array<i64: 1, 128, 512>}, {transform_indices = @transform_15, window_bounds = array<i64: 1, 1, 512>}, {transform_indices = @transform_16, window_bounds = array<i64: 1, 512, 128>}, {transform_indices = @transform_17, window_bounds = array<i64: 1, 1, 128>}, {pipeline_mode = #tpu.pipeline_mode<synchronous>, transform_indices = @transform_18, window_bounds = array<i64: 2, 8, 128>}]} {
    %c0_i32 = arith.constant 0 : i32
    %0 = arith.cmpi eq, %arg0, %c0_i32 : i32
    %1 = arith.extui %0 : i1 to i32
    %c0_i32_0 = arith.constant 0 : i32
    %2 = arith.cmpi ne, %1, %c0_i32_0 : i32
    scf.if %2 {
      %c0_82 = arith.constant 0 : index
      %c0_83 = arith.constant 0 : index
      %187 = vector.load %arg1[%c0_82, %c0_83] : memref<16x192xf32, #tpu.memory_space<vmem>>, vector<16x192xf32>
      %c0_84 = arith.constant 0 : index
      %c0_85 = arith.constant 0 : index
      %188 = vector.load %arg2[%c0_84, %c0_85] : memref<192x128xf32, #tpu.memory_space<vmem>>, vector<192x128xf32>
      %cst_86 = arith.constant dense<0.000000e+00> : vector<16x128xf32>
      %189 = tpu.matmul %187, %188, %cst_86 {dimension_numbers = #tpu.dot_dimension_numbers<[1], [0], [0], [1], [0, 0, 1, 1], [], []>} : vector<16x192xf32>, vector<192x128xf32>, vector<16x128xf32> -> vector<16x128xf32>
      %190 = vector.shape_cast %189 : vector<16x128xf32> to vector<2x8x128xf32>
      %c0_87 = arith.constant 0 : index
      %c0_88 = arith.constant 0 : index
      %191 = vector.load %arg3[%c0_87, %c0_88] : memref<8x128xf32, #tpu.memory_space<vmem>>, vector<8x128xf32>
      %192 = vector.shape_cast %191 : vector<8x128xf32> to vector<1x8x128xf32>
      %193 = vector.broadcast %192 : vector<1x8x128xf32> to vector<2x8x128xf32>
      %194 = arith.addf %190, %193 : vector<2x8x128xf32>
      %c0_89 = arith.constant 0 : index
      %c0_90 = arith.constant 0 : index
      %195 = vector.load %arg4[%c0_89, %c0_90] : memref<1x128xf32, #tpu.memory_space<vmem>>, vector<1x128xf32>
      %c0_91 = arith.constant 0 : index
      %c0_92 = arith.constant 0 : index
      %196 = vector.load %arg5[%c0_91, %c0_92] : memref<1x128xf32, #tpu.memory_space<vmem>>, vector<1x128xf32>
      %cst_93 = arith.constant dense<0.000000e+00> : vector<2x8xf32>
      %197 = vector.multi_reduction <add>, %194, %cst_93 [2] : vector<2x8x128xf32> to vector<2x8xf32>
      %198 = vector.shape_cast %197 : vector<2x8xf32> to vector<2x8x1xf32>
      %cst_94 = arith.constant 1.280000e+02 : f32
      %199 = vector.broadcast %cst_94 : f32 to vector<2x8x1xf32>
      %200 = arith.divf %198, %199 : vector<2x8x1xf32>
      %201 = vector.broadcast %200 : vector<2x8x1xf32> to vector<2x8x128xf32>
      %202 = arith.subf %194, %201 : vector<2x8x128xf32>
      %203 = arith.mulf %202, %202 : vector<2x8x128xf32>
      %cst_95 = arith.constant dense<0.000000e+00> : vector<2x8xf32>
      %204 = vector.multi_reduction <add>, %203, %cst_95 [2] : vector<2x8x128xf32> to vector<2x8xf32>
      %205 = vector.shape_cast %204 : vector<2x8xf32> to vector<2x8x1xf32>
      %cst_96 = arith.constant 1.280000e+02 : f32
      %206 = vector.broadcast %cst_96 : f32 to vector<2x8x1xf32>
      %207 = arith.divf %205, %206 : vector<2x8x1xf32>
      %208 = vector.broadcast %200 : vector<2x8x1xf32> to vector<2x8x128xf32>
      %209 = arith.subf %194, %208 : vector<2x8x128xf32>
      %cst_97 = arith.constant 9.99999974E-6 : f32
      %210 = vector.broadcast %cst_97 : f32 to vector<2x8x1xf32>
      %211 = arith.addf %207, %210 : vector<2x8x1xf32>
      %212 = math.rsqrt %211 : vector<2x8x1xf32>
      %213 = vector.broadcast %212 : vector<2x8x1xf32> to vector<2x8x128xf32>
      %214 = arith.mulf %209, %213 : vector<2x8x128xf32>
      %215 = vector.shape_cast %195 : vector<1x128xf32> to vector<1x1x128xf32>
      %216 = vector.broadcast %215 : vector<1x1x128xf32> to vector<2x8x128xf32>
      %217 = arith.mulf %214, %216 : vector<2x8x128xf32>
      %218 = vector.shape_cast %196 : vector<1x128xf32> to vector<1x1x128xf32>
      %219 = vector.broadcast %218 : vector<1x1x128xf32> to vector<2x8x128xf32>
      %220 = arith.addf %217, %219 : vector<2x8x128xf32>
      %c0_98 = arith.constant 0 : index
      %c0_99 = arith.constant 0 : index
      %c0_100 = arith.constant 0 : index
      %221 = vector.load %arg19[%c0_98, %c0_99, %c0_100] : memref<2x8x128xf32, #tpu.memory_space<vmem>>, vector<2x8x128xf32>
      tpu.vector_store %arg19[%c0_98, %c0_99, %c0_100], %220 {strides = array<i32>} : memref<2x8x128xf32, #tpu.memory_space<vmem>>, vector<2x8x128xf32>,
    } else {
    }
    %c0 = arith.constant 0 : index
    %c0_1 = arith.constant 0 : index
    %c0_2 = arith.constant 0 : index
    %3 = vector.load %arg19[%c0, %c0_1, %c0_2] : memref<2x8x128xf32, #tpu.memory_space<vmem>>, vector<2x8x128xf32>
    %4 = vector.shape_cast %3 : vector<2x8x128xf32> to vector<16x128xf32>
    %c0_3 = arith.constant 0 : index
    %c0_4 = arith.constant 0 : index
    %5 = vector.load %arg6[%c0_3, %c0_4] : memref<1x8xf32, #tpu.memory_space<vmem>>, vector<1x8xf32>
    %6 = vector.shape_cast %5 : vector<1x8xf32> to vector<1x1x8xf32>
    %c0_5 = arith.constant 0 : index
    %c0_6 = arith.constant 0 : index
    %c0_7 = arith.constant 0 : index
    %7 = vector.load %arg7[%c0_5, %c0_6, %c0_7] : memref<1x1x128xf32, #tpu.memory_space<vmem>>, vector<1x1x128xf32>
    %8 = vector.shape_cast %7 : vector<1x1x128xf32> to vector<1x128xf32>
    %c0_8 = arith.constant 0 : index
    %c0_9 = arith.constant 0 : index
    %c0_10 = arith.constant 0 : index
    %9 = vector.load %arg8[%c0_8, %c0_9, %c0_10] : memref<1x1x128xf32, #tpu.memory_space<vmem>>, vector<1x1x128xf32>
    %10 = vector.shape_cast %9 : vector<1x1x128xf32> to vector<1x128xf32>
    %cst = arith.constant dense<0.000000e+00> : vector<16xf32>
    %11 = vector.multi_reduction <add>, %4, %cst [1] : vector<16x128xf32> to vector<16xf32>
    %12 = vector.shape_cast %11 : vector<16xf32> to vector<16x1xf32>
    %cst_11 = arith.constant 1.280000e+02 : f32
    %13 = vector.broadcast %cst_11 : f32 to vector<16x1xf32>
    %14 = arith.divf %12, %13 : vector<16x1xf32>
    %15 = vector.broadcast %14 : vector<16x1xf32> to vector<16x128xf32>
    %16 = arith.subf %4, %15 : vector<16x128xf32>
    %17 = arith.mulf %16, %16 : vector<16x128xf32>
    %cst_12 = arith.constant dense<0.000000e+00> : vector<16xf32>
    %18 = vector.multi_reduction <add>, %17, %cst_12 [1] : vector<16x128xf32> to vector<16xf32>
    %19 = vector.shape_cast %18 : vector<16xf32> to vector<16x1xf32>
    %cst_13 = arith.constant 1.280000e+02 : f32
    %20 = vector.broadcast %cst_13 : f32 to vector<16x1xf32>
    %21 = arith.divf %19, %20 : vector<16x1xf32>
    %22 = vector.broadcast %14 : vector<16x1xf32> to vector<16x128xf32>
    %23 = arith.subf %4, %22 : vector<16x128xf32>
    %cst_14 = arith.constant 9.99999974E-6 : f32
    %24 = vector.broadcast %cst_14 : f32 to vector<16x1xf32>
    %25 = arith.addf %21, %24 : vector<16x1xf32>
    %26 = math.rsqrt %25 : vector<16x1xf32>
    %27 = vector.broadcast %26 : vector<16x1xf32> to vector<16x128xf32>
    %28 = arith.mulf %23, %27 : vector<16x128xf32>
    %29 = vector.broadcast %8 : vector<1x128xf32> to vector<16x128xf32>
    %30 = arith.mulf %28, %29 : vector<16x128xf32>
    %31 = vector.broadcast %10 : vector<1x128xf32> to vector<16x128xf32>
    %32 = arith.addf %30, %31 : vector<16x128xf32>
    %33 = arith.truncf %32 : vector<16x128xf32> to vector<16x128xbf16>
    %c0_15 = arith.constant 0 : index
    %c0_16 = arith.constant 0 : index
    %c0_17 = arith.constant 0 : index
    %34 = vector.load %arg9[%c0_15, %c0_16, %c0_17] : memref<1x128x768xbf16, #tpu.memory_space<vmem>>, vector<1x128x768xbf16>
    %35 = vector.shape_cast %34 : vector<1x128x768xbf16> to vector<128x768xbf16>
    %cst_18 = arith.constant dense<0.000000e+00> : vector<16x768xf32>
    %36 = tpu.matmul %33, %35, %cst_18 {dimension_numbers = #tpu.dot_dimension_numbers<[1], [0], [0], [1], [0, 0, 1, 1], [], []>} : vector<16x128xbf16>, vector<128x768xbf16>, vector<16x768xf32> -> vector<16x768xf32>
    %c0_19 = arith.constant 0 : index
    %c0_20 = arith.constant 0 : index
    %c0_21 = arith.constant 0 : index
    %37 = vector.load %arg10[%c0_19, %c0_20, %c0_21] : memref<1x1x768xf32, #tpu.memory_space<vmem>>, vector<1x1x768xf32>
    %38 = vector.shape_cast %37 : vector<1x1x768xf32> to vector<1x768xf32>
    %39 = vector.broadcast %38 : vector<1x768xf32> to vector<16x768xf32>
    %40 = arith.addf %36, %39 : vector<16x768xf32>
    %41 = vector.shape_cast %40 : vector<16x768xf32> to vector<2x8x768xf32>
    %c0_22 = arith.constant 0 : index
    %c0_23 = arith.constant 0 : index
    %c0_24 = arith.constant 0 : index
    %42 = vector.load %arg11[%c0_22, %c0_23, %c0_24] : memref<1x256x128xbf16, #tpu.memory_space<vmem>>, vector<1x256x128xbf16>
    %43 = vector.shape_cast %42 : vector<1x256x128xbf16> to vector<256x128xbf16>
    %cst_25 = arith.constant 0.000000e+00 : f32
    %44 = vector.broadcast %cst_25 : f32 to vector<16x128xf32>
    %45 = vector.extract_strided_slice %41 {offsets = [0, 0, 0], sizes = [2, 8, 128], strides = [1, 1, 1]} : vector<2x8x768xf32> to vector<2x8x128xf32>
    %46 = arith.truncf %45 : vector<2x8x128xf32> to vector<2x8x128xbf16>
    %47 = vector.extract_strided_slice %41 {offsets = [0, 0, 256], sizes = [2, 8, 128], strides = [1, 1, 1]} : vector<2x8x768xf32> to vector<2x8x128xf32>
    %48 = arith.truncf %47 : vector<2x8x128xf32> to vector<2x8x128xbf16>
    %49 = vector.extract_strided_slice %41 {offsets = [0, 0, 512], sizes = [2, 8, 128], strides = [1, 1, 1]} : vector<2x8x768xf32> to vector<2x8x128xf32>
    %50 = arith.truncf %49 : vector<2x8x128xf32> to vector<2x8x128xbf16>
    "tpu.trace_start"() <{level = 10 : i32, message = "bqd,bkd->bqk"}> : () -> ()
    %cst_26 = arith.constant dense<0.000000e+00> : vector<2x8x8xf32>
    %51 = tpu.matmul %46, %48, %cst_26 {dimension_numbers = #tpu.dot_dimension_numbers<[2], [2], [1], [1], [0, 0, 0, 1, 1, 1], [0], [0]>} : vector<2x8x128xbf16>, vector<2x8x128xbf16>, vector<2x8x8xf32> -> vector<2x8x8xf32>
    "tpu.trace_stop"() : () -> ()
    %52 = vector.broadcast %6 : vector<1x1x8xf32> to vector<2x8x8xf32>
    %53 = arith.addf %51, %52 : vector<2x8x8xf32>
    %cst_27 = arith.constant dense<0xFF800000> : vector<2x8xf32>
    %54 = vector.multi_reduction <maximumf>, %53, %cst_27 [2] : vector<2x8x8xf32> to vector<2x8xf32>
    %55 = vector.shape_cast %54 : vector<2x8xf32> to vector<2x8x1xf32>
    %56 = vector.broadcast %55 : vector<2x8x1xf32> to vector<2x8x8xf32>
    %57 = arith.subf %53, %56 : vector<2x8x8xf32>
    %58 = math.exp %57 : vector<2x8x8xf32>
    %cst_28 = arith.constant dense<0.000000e+00> : vector<2x8xf32>
    %59 = vector.multi_reduction <add>, %58, %cst_28 [2] : vector<2x8x8xf32> to vector<2x8xf32>
    %60 = vector.shape_cast %59 : vector<2x8xf32> to vector<2x8x1xf32>
    %61 = tpu.reciprocal %60 {approx = true} : vector<2x8x1xf32> -> vector<2x8x1xf32>
    %62 = vector.broadcast %61 : vector<2x8x1xf32> to vector<2x8x8xf32>
    %63 = arith.mulf %58, %62 : vector<2x8x8xf32>
    %64 = arith.truncf %63 : vector<2x8x8xf32> to vector<2x8x8xbf16>
    "tpu.trace_start"() <{level = 10 : i32, message = "bqk,bkd->bqd"}> : () -> ()
    %cst_29 = arith.constant dense<0.000000e+00> : vector<2x8x128xf32>
    %65 = tpu.matmul %64, %50, %cst_29 {dimension_numbers = #tpu.dot_dimension_numbers<[2], [1], [1], [2], [0, 0, 0, 1, 1, 2], [0], [0]>} : vector<2x8x8xbf16>, vector<2x8x128xbf16>, vector<2x8x128xf32> -> vector<2x8x128xf32>
    "tpu.trace_stop"() : () -> ()
    %66 = vector.shape_cast %65 : vector<2x8x128xf32> to vector<16x128xf32>
    %67 = arith.truncf %66 : vector<16x128xf32> to vector<16x128xbf16>
    %68 = vector.extract_strided_slice %43 {offsets = [0, 0], sizes = [128, 128], strides = [1, 1]} : vector<256x128xbf16> to vector<128x128xbf16>
    %cst_30 = arith.constant dense<0.000000e+00> : vector<16x128xf32>
    %69 = tpu.matmul %67, %68, %cst_30 {dimension_numbers = #tpu.dot_dimension_numbers<[1], [0], [0], [1], [0, 0, 1, 1], [], []>} : vector<16x128xbf16>, vector<128x128xbf16>, vector<16x128xf32> -> vector<16x128xf32>
    %70 = arith.addf %44, %69 : vector<16x128xf32>
    %71 = vector.extract_strided_slice %41 {offsets = [0, 0, 128], sizes = [2, 8, 128], strides = [1, 1, 1]} : vector<2x8x768xf32> to vector<2x8x128xf32>
    %72 = arith.truncf %71 : vector<2x8x128xf32> to vector<2x8x128xbf16>
    %73 = vector.extract_strided_slice %41 {offsets = [0, 0, 384], sizes = [2, 8, 128], strides = [1, 1, 1]} : vector<2x8x768xf32> to vector<2x8x128xf32>
    %74 = arith.truncf %73 : vector<2x8x128xf32> to vector<2x8x128xbf16>
    %75 = vector.extract_strided_slice %41 {offsets = [0, 0, 640], sizes = [2, 8, 128], strides = [1, 1, 1]} : vector<2x8x768xf32> to vector<2x8x128xf32>
    %76 = arith.truncf %75 : vector<2x8x128xf32> to vector<2x8x128xbf16>
    "tpu.trace_start"() <{level = 10 : i32, message = "bqd,bkd->bqk"}> : () -> ()
    %cst_31 = arith.constant dense<0.000000e+00> : vector<2x8x8xf32>
    %77 = tpu.matmul %72, %74, %cst_31 {dimension_numbers = #tpu.dot_dimension_numbers<[2], [2], [1], [1], [0, 0, 0, 1, 1, 1], [0], [0]>} : vector<2x8x128xbf16>, vector<2x8x128xbf16>, vector<2x8x8xf32> -> vector<2x8x8xf32>
    "tpu.trace_stop"() : () -> ()
    %78 = vector.broadcast %6 : vector<1x1x8xf32> to vector<2x8x8xf32>
    %79 = arith.addf %77, %78 : vector<2x8x8xf32>
    %cst_32 = arith.constant dense<0xFF800000> : vector<2x8xf32>
    %80 = vector.multi_reduction <maximumf>, %79, %cst_32 [2] : vector<2x8x8xf32> to vector<2x8xf32>
    %81 = vector.shape_cast %80 : vector<2x8xf32> to vector<2x8x1xf32>
    %82 = vector.broadcast %81 : vector<2x8x1xf32> to vector<2x8x8xf32>
    %83 = arith.subf %79, %82 : vector<2x8x8xf32>
    %84 = math.exp %83 : vector<2x8x8xf32>
    %cst_33 = arith.constant dense<0.000000e+00> : vector<2x8xf32>
    %85 = vector.multi_reduction <add>, %84, %cst_33 [2] : vector<2x8x8xf32> to vector<2x8xf32>
    %86 = vector.shape_cast %85 : vector<2x8xf32> to vector<2x8x1xf32>
    %87 = tpu.reciprocal %86 {approx = true} : vector<2x8x1xf32> -> vector<2x8x1xf32>
    %88 = vector.broadcast %87 : vector<2x8x1xf32> to vector<2x8x8xf32>
    %89 = arith.mulf %84, %88 : vector<2x8x8xf32>
    %90 = arith.truncf %89 : vector<2x8x8xf32> to vector<2x8x8xbf16>
    "tpu.trace_start"() <{level = 10 : i32, message = "bqk,bkd->bqd"}> : () -> ()
    %cst_34 = arith.constant dense<0.000000e+00> : vector<2x8x128xf32>
    %91 = tpu.matmul %90, %76, %cst_34 {dimension_numbers = #tpu.dot_dimension_numbers<[2], [1], [1], [2], [0, 0, 0, 1, 1, 2], [0], [0]>} : vector<2x8x8xbf16>, vector<2x8x128xbf16>, vector<2x8x128xf32> -> vector<2x8x128xf32>
    "tpu.trace_stop"() : () -> ()
    %92 = vector.shape_cast %91 : vector<2x8x128xf32> to vector<16x128xf32>
    %93 = arith.truncf %92 : vector<16x128xf32> to vector<16x128xbf16>
    %94 = vector.extract_strided_slice %43 {offsets = [128, 0], sizes = [128, 128], strides = [1, 1]} : vector<256x128xbf16> to vector<128x128xbf16>
    %cst_35 = arith.constant dense<0.000000e+00> : vector<16x128xf32>
    %95 = tpu.matmul %93, %94, %cst_35 {dimension_numbers = #tpu.dot_dimension_numbers<[1], [0], [0], [1], [0, 0, 1, 1], [], []>} : vector<16x128xbf16>, vector<128x128xbf16>, vector<16x128xf32> -> vector<16x128xf32>
    %96 = arith.addf %70, %95 : vector<16x128xf32>
    %97 = arith.addf %4, %96 : vector<16x128xf32>
    %c0_36 = arith.constant 0 : index
    %c0_37 = arith.constant 0 : index
    %c0_38 = arith.constant 0 : index
    %98 = vector.load %arg12[%c0_36, %c0_37, %c0_38] : memref<1x1x128xf32, #tpu.memory_space<vmem>>, vector<1x1x128xf32>
    %99 = vector.shape_cast %98 : vector<1x1x128xf32> to vector<1x128xf32>
    %100 = vector.broadcast %99 : vector<1x128xf32> to vector<16x128xf32>
    %101 = arith.addf %97, %100 : vector<16x128xf32>
    %c0_39 = arith.constant 0 : index
    %c0_40 = arith.constant 0 : index
    %c0_41 = arith.constant 0 : index
    %102 = vector.load %arg13[%c0_39, %c0_40, %c0_41] : memref<1x1x128xf32, #tpu.memory_space<vmem>>, vector<1x1x128xf32>
    %103 = vector.shape_cast %102 : vector<1x1x128xf32> to vector<1x128xf32>
    %c0_42 = arith.constant 0 : index
    %c0_43 = arith.constant 0 : index
    %c0_44 = arith.constant 0 : index
    %104 = vector.load %arg14[%c0_42, %c0_43, %c0_44] : memref<1x1x128xf32, #tpu.memory_space<vmem>>, vector<1x1x128xf32>
    %105 = vector.shape_cast %104 : vector<1x1x128xf32> to vector<1x128xf32>
    %cst_45 = arith.constant dense<0.000000e+00> : vector<16xf32>
    %106 = vector.multi_reduction <add>, %101, %cst_45 [1] : vector<16x128xf32> to vector<16xf32>
    %107 = vector.shape_cast %106 : vector<16xf32> to vector<16x1xf32>
    %cst_46 = arith.constant 1.280000e+02 : f32
    %108 = vector.broadcast %cst_46 : f32 to vector<16x1xf32>
    %109 = arith.divf %107, %108 : vector<16x1xf32>
    %110 = vector.broadcast %109 : vector<16x1xf32> to vector<16x128xf32>
    %111 = arith.subf %101, %110 : vector<16x128xf32>
    %112 = arith.mulf %111, %111 : vector<16x128xf32>
    %cst_47 = arith.constant dense<0.000000e+00> : vector<16xf32>
    %113 = vector.multi_reduction <add>, %112, %cst_47 [1] : vector<16x128xf32> to vector<16xf32>
    %114 = vector.shape_cast %113 : vector<16xf32> to vector<16x1xf32>
    %cst_48 = arith.constant 1.280000e+02 : f32
    %115 = vector.broadcast %cst_48 : f32 to vector<16x1xf32>
    %116 = arith.divf %114, %115 : vector<16x1xf32>
    %117 = vector.broadcast %109 : vector<16x1xf32> to vector<16x128xf32>
    %118 = arith.subf %101, %117 : vector<16x128xf32>
    %cst_49 = arith.constant 9.99999974E-6 : f32
    %119 = vector.broadcast %cst_49 : f32 to vector<16x1xf32>
    %120 = arith.addf %116, %119 : vector<16x1xf32>
    %121 = math.rsqrt %120 : vector<16x1xf32>
    %122 = vector.broadcast %121 : vector<16x1xf32> to vector<16x128xf32>
    %123 = arith.mulf %118, %122 : vector<16x128xf32>
    %124 = vector.broadcast %103 : vector<1x128xf32> to vector<16x128xf32>
    %125 = arith.mulf %123, %124 : vector<16x128xf32>
    %126 = vector.broadcast %105 : vector<1x128xf32> to vector<16x128xf32>
    %127 = arith.addf %125, %126 : vector<16x128xf32>
    %128 = arith.truncf %127 : vector<16x128xf32> to vector<16x128xbf16>
    %c0_50 = arith.constant 0 : index
    %c0_51 = arith.constant 0 : index
    %c0_52 = arith.constant 0 : index
    %129 = vector.load %arg15[%c0_50, %c0_51, %c0_52] : memref<1x128x512xbf16, #tpu.memory_space<vmem>>, vector<1x128x512xbf16>
    %130 = vector.shape_cast %129 : vector<1x128x512xbf16> to vector<128x512xbf16>
    %cst_53 = arith.constant dense<0.000000e+00> : vector<16x512xf32>
    %131 = tpu.matmul %128, %130, %cst_53 {dimension_numbers = #tpu.dot_dimension_numbers<[1], [0], [0], [1], [0, 0, 1, 1], [], []>} : vector<16x128xbf16>, vector<128x512xbf16>, vector<16x512xf32> -> vector<16x512xf32>
    %c0_54 = arith.constant 0 : index
    %c0_55 = arith.constant 0 : index
    %c0_56 = arith.constant 0 : index
    %132 = vector.load %arg16[%c0_54, %c0_55, %c0_56] : memref<1x1x512xf32, #tpu.memory_space<vmem>>, vector<1x1x512xf32>
    %133 = vector.shape_cast %132 : vector<1x1x512xf32> to vector<1x512xf32>
    %134 = vector.broadcast %133 : vector<1x512xf32> to vector<16x512xf32>
    %135 = arith.addf %131, %134 : vector<16x512xf32>
    %cst_57 = arith.constant 0.707106769 : f32
    %136 = vector.broadcast %cst_57 : f32 to vector<16x512xf32>
    %137 = arith.mulf %135, %136 : vector<16x512xf32>
    %138 = math.absf %137 : vector<16x512xf32>
    %cst_58 = arith.constant 0.327591091 : f32
    %139 = vector.broadcast %cst_58 : f32 to vector<16x512xf32>
    %140 = arith.mulf %139, %138 : vector<16x512xf32>
    %cst_59 = arith.constant 1.000000e+00 : f32
    %141 = vector.broadcast %cst_59 : f32 to vector<16x512xf32>
    %142 = arith.addf %141, %140 : vector<16x512xf32>
    %cst_60 = arith.constant 1.000000e+00 : f32
    %143 = vector.broadcast %cst_60 : f32 to vector<16x512xf32>
    %144 = arith.divf %143, %142 : vector<16x512xf32>
    %cst_61 = arith.constant 1.06140542 : f32
    %145 = vector.broadcast %cst_61 : f32 to vector<16x512xf32>
    %146 = arith.mulf %144, %145 : vector<16x512xf32>
    %cst_62 = arith.constant -1.45315206 : f32
    %147 = vector.broadcast %cst_62 : f32 to vector<16x512xf32>
    %148 = arith.addf %147, %146 : vector<16x512xf32>
    %149 = arith.mulf %144, %148 : vector<16x512xf32>
    %cst_63 = arith.constant 1.42141378 : f32
    %150 = vector.broadcast %cst_63 : f32 to vector<16x512xf32>
    %151 = arith.addf %150, %149 : vector<16x512xf32>
    %152 = arith.mulf %144, %151 : vector<16x512xf32>
    %cst_64 = arith.constant -0.284496725 : f32
    %153 = vector.broadcast %cst_64 : f32 to vector<16x512xf32>
    %154 = arith.addf %153, %152 : vector<16x512xf32>
    %155 = arith.mulf %144, %154 : vector<16x512xf32>
    %cst_65 = arith.constant 0.254829586 : f32
    %156 = vector.broadcast %cst_65 : f32 to vector<16x512xf32>
    %157 = arith.addf %156, %155 : vector<16x512xf32>
    %158 = arith.mulf %144, %157 : vector<16x512xf32>
    %cst_66 = arith.constant 0.000000e+00 : f32
    %159 = vector.broadcast %cst_66 : f32 to vector<16x512xf32>
    %160 = arith.subf %159, %138 : vector<16x512xf32>
    %161 = arith.mulf %160, %138 : vector<16x512xf32>
    %162 = math.exp %161 : vector<16x512xf32>
    %163 = arith.mulf %158, %162 : vector<16x512xf32>
    %cst_67 = arith.constant 1.000000e+00 : f32
    %164 = vector.broadcast %cst_67 : f32 to vector<16x512xf32>
    %165 = arith.subf %164, %163 : vector<16x512xf32>
    %cst_68 = arith.constant 0.000000e+00 : f32
    %166 = vector.broadcast %cst_68 : f32 to vector<16x512xf32>
    %167 = arith.cmpf oge, %137, %166 : vector<16x512xf32>
    %cst_69 = arith.constant 0.000000e+00 : f32
    %168 = vector.broadcast %cst_69 : f32 to vector<16x512xf32>
    %169 = arith.subf %168, %165 : vector<16x512xf32>
    %170 = arith.select %167, %165, %169 : vector<16x512xi1>, vector<16x512xf32>
    %cst_70 = arith.constant 5.000000e-01 : f32
    %171 = vector.broadcast %cst_70 : f32 to vector<16x512xf32>
    %172 = arith.mulf %171, %135 : vector<16x512xf32>
    %cst_71 = arith.constant 1.000000e+00 : f32
    %173 = vector.broadcast %cst_71 : f32 to vector<16x512xf32>
    %174 = arith.addf %173, %170 : vector<16x512xf32>
    %175 = arith.mulf %172, %174 : vector<16x512xf32>
    %176 = arith.truncf %175 : vector<16x512xf32> to vector<16x512xbf16>
    %c0_72 = arith.constant 0 : index
    %c0_73 = arith.constant 0 : index
    %c0_74 = arith.constant 0 : index
    %177 = vector.load %arg17[%c0_72, %c0_73, %c0_74] : memref<1x512x128xbf16, #tpu.memory_space<vmem>>, vector<1x512x128xbf16>
    %178 = vector.shape_cast %177 : vector<1x512x128xbf16> to vector<512x128xbf16>
    %cst_75 = arith.constant dense<0.000000e+00> : vector<16x128xf32>
    %179 = tpu.matmul %176, %178, %cst_75 {dimension_numbers = #tpu.dot_dimension_numbers<[1], [0], [0], [1], [0, 0, 1, 1], [], []>} : vector<16x512xbf16>, vector<512x128xbf16>, vector<16x128xf32> -> vector<16x128xf32>
    %c0_76 = arith.constant 0 : index
    %c0_77 = arith.constant 0 : index
    %c0_78 = arith.constant 0 : index
    %180 = vector.load %arg18[%c0_76, %c0_77, %c0_78] : memref<1x1x128xf32, #tpu.memory_space<vmem>>, vector<1x1x128xf32>
    %181 = vector.shape_cast %180 : vector<1x1x128xf32> to vector<1x128xf32>
    %182 = vector.broadcast %181 : vector<1x128xf32> to vector<16x128xf32>
    %183 = arith.addf %179, %182 : vector<16x128xf32>
    %184 = arith.addf %101, %183 : vector<16x128xf32>
    %185 = vector.shape_cast %184 : vector<16x128xf32> to vector<2x8x128xf32>
    %c0_79 = arith.constant 0 : index
    %c0_80 = arith.constant 0 : index
    %c0_81 = arith.constant 0 : index
    %186 = vector.load %arg19[%c0_79, %c0_80, %c0_81] : memref<2x8x128xf32, #tpu.memory_space<vmem>>, vector<2x8x128xf32>
    tpu.vector_store %arg19[%c0_79, %c0_80, %c0_81], %185 {strides = array<i32>} : memref<2x8x128xf32, #tpu.memory_space<vmem>>, vector<2x8x128xf32>,
    return
  }
  func.func @transform_0(%arg0: i32) -> (i32, i32) {
    %c0_i32 = arith.constant 0 : i32
    %c0_i32_0 = arith.constant 0 : i32
    %c0_i32_1 = arith.constant 0 : i32
    return %c0_i32, %c0_i32_0 : i32, i32
  }
  func.func @transform_1(%arg0: i32) -> (i32, i32) {
    %c0_i32 = arith.constant 0 : i32
    %c0_i32_0 = arith.constant 0 : i32
    %c0_i32_1 = arith.constant 0 : i32
    return %c0_i32, %c0_i32_0 : i32, i32
  }
  func.func @transform_2(%arg0: i32) -> (i32, i32) {
    %c0_i32 = arith.constant 0 : i32
    %c0_i32_0 = arith.constant 0 : i32
    %c0_i32_1 = arith.constant 0 : i32
    return %c0_i32, %c0_i32_0 : i32, i32
  }
  func.func @transform_3(%arg0: i32) -> (i32, i32) {
    %c0_i32 = arith.constant 0 : i32
    %c0_i32_0 = arith.constant 0 : i32
    %c0_i32_1 = arith.constant 0 : i32
    return %c0_i32, %c0_i32_0 : i32, i32
  }
  func.func @transform_4(%arg0: i32) -> (i32, i32) {
    %c0_i32 = arith.constant 0 : i32
    %c0_i32_0 = arith.constant 0 : i32
    %c0_i32_1 = arith.constant 0 : i32
    return %c0_i32, %c0_i32_0 : i32, i32
  }
  func.func @transform_5(%arg0: i32) -> (i32, i32) {
    %c0_i32 = arith.constant 0 : i32
    %c0_i32_0 = arith.constant 0 : i32
    %c0_i32_1 = arith.constant 0 : i32
    return %c0_i32, %c0_i32_0 : i32, i32
  }
  func.func @transform_6(%arg0: i32) -> (i32, i32, i32) {
    %c0_i32 = arith.constant 0 : i32
    %c0_i32_0 = arith.constant 0 : i32
    %c0_i32_1 = arith.constant 0 : i32
    return %arg0, %c0_i32, %c0_i32_0 : i32, i32, i32
  }
  func.func @transform_7(%arg0: i32) -> (i32, i32, i32) {
    %c0_i32 = arith.constant 0 : i32
    %c0_i32_0 = arith.constant 0 : i32
    %c0_i32_1 = arith.constant 0 : i32
    return %arg0, %c0_i32, %c0_i32_0 : i32, i32, i32
  }
  func.func @transform_8(%arg0: i32) -> (i32, i32, i32) {
    %c0_i32 = arith.constant 0 : i32
    %c0_i32_0 = arith.constant 0 : i32
    %c0_i32_1 = arith.constant 0 : i32
    return %arg0, %c0_i32, %c0_i32_0 : i32, i32, i32
  }
  func.func @transform_9(%arg0: i32) -> (i32, i32, i32) {
    %c0_i32 = arith.constant 0 : i32
    %c0_i32_0 = arith.constant 0 : i32
    %c0_i32_1 = arith.constant 0 : i32
    return %arg0, %c0_i32, %c0_i32_0 : i32, i32, i32
  }
  func.func @transform_10(%arg0: i32) -> (i32, i32, i32) {
    %c0_i32 = arith.constant 0 : i32
    %c0_i32_0 = arith.constant 0 : i32
    %c0_i32_1 = arith.constant 0 : i32
    return %arg0, %c0_i32, %c0_i32_0 : i32, i32, i32
  }
  func.func @transform_11(%arg0: i32) -> (i32, i32, i32) {
    %c0_i32 = arith.constant 0 : i32
    %c0_i32_0 = arith.constant 0 : i32
    %c0_i32_1 = arith.constant 0 : i32
    return %arg0, %c0_i32, %c0_i32_0 : i32, i32, i32
  }
  func.func @transform_12(%arg0: i32) -> (i32, i32, i32) {
    %c0_i32 = arith.constant 0 : i32
    %c0_i32_0 = arith.constant 0 : i32
    %c0_i32_1 = arith.constant 0 : i32
    return %arg0, %c0_i32, %c0_i32_0 : i32, i32, i32
  }
  func.func @transform_13(%arg0: i32) -> (i32, i32, i32) {
    %c0_i32 = arith.constant 0 : i32
    %c0_i32_0 = arith.constant 0 : i32
    %c0_i32_1 = arith.constant 0 : i32
    return %arg0, %c0_i32, %c0_i32_0 : i32, i32, i32
  }
  func.func @transform_14(%arg0: i32) -> (i32, i32, i32) {
    %c0_i32 = arith.constant 0 : i32
    %c0_i32_0 = arith.constant 0 : i32
    %c0_i32_1 = arith.constant 0 : i32
    return %arg0, %c0_i32, %c0_i32_0 : i32, i32, i32
  }
  func.func @transform_15(%arg0: i32) -> (i32, i32, i32) {
    %c0_i32 = arith.constant 0 : i32
    %c0_i32_0 = arith.constant 0 : i32
    %c0_i32_1 = arith.constant 0 : i32
    return %arg0, %c0_i32, %c0_i32_0 : i32, i32, i32
  }
  func.func @transform_16(%arg0: i32) -> (i32, i32, i32) {
    %c0_i32 = arith.constant 0 : i32
    %c0_i32_0 = arith.constant 0 : i32
    %c0_i32_1 = arith.constant 0 : i32
    return %arg0, %c0_i32, %c0_i32_0 : i32, i32, i32
  }
  func.func @transform_17(%arg0: i32) -> (i32, i32, i32) {
    %c0_i32 = arith.constant 0 : i32
    %c0_i32_0 = arith.constant 0 : i32
    %c0_i32_1 = arith.constant 0 : i32
    return %arg0, %c0_i32, %c0_i32_0 : i32, i32, i32
  }
  func.func @transform_18(%arg0: i32) -> (i32, i32, i32) {
    %c0_i32 = arith.constant 0 : i32
    %c0_i32_0 = arith.constant 0 : i32
    %c0_i32_1 = arith.constant 0 : i32
    %c0_i32_2 = arith.constant 0 : i32
    return %c0_i32, %c0_i32_0, %c0_i32_1 : i32, i32, i32
  }
}

</mosaic_0001>

<bundles_post_ra>
// kernel: tpu_custom_call.1
= control target key start
LH: loop header
LB: loop body
LE: loop exit
PB: predicated region body
PF: predicated region fallthrough
CT: control target
= control target key end

     0   :  { %s5518_s0 = inlined_call_operand.hbm [shape: f32[16,192], index: 0, kind: input, shape index: {}]   ;;  %s5519_s1 = inlined_call_operand.hbm [shape: f32[192,128], index: 1, kind: input, shape index: {}]   ;;  %s5520_s2 = inlined_call_operand.hbm [shape: f32[8,128], index: 2, kind: input, shape index: {}]   ;;  %s5521_s3 = inlined_call_operand.hbm [shape: f32[1,128], index: 3, kind: input, shape index: {}]   ;;  %s5522_s4 = inlined_call_operand.hbm [shape: f32[1,128], index: 4, kind: input, shape index: {}]   ;;  %s5523_s5 = inlined_call_operand.hbm [shape: f32[1,8], index: 5, kind: input, shape index: {}]   ;;  %s5524_s6 = inlined_call_operand.vmem [shape: f32[2,1,128], index: 6, kind: input, shape index: {}]   ;;  %s5525_s7 = inlined_call_operand.vmem [shape: f32[2,1,128], index: 7, kind: input, shape index: {}]   ;;  %s5526_s8 = inlined_call_operand.hbm [shape: bf16[2,128,768], index: 8, kind: input, shape index: {}]   ;;  %s5527_s9 = inlined_call_operand.vmem [shape: f32[2,1,768], index: 9, kind: input, shape index: {}]   ;;  %s5528_s10 = inlined_call_operand.hbm [shape: bf16[2,256,128], index: 10, kind: input, shape index: {}]   ;;  %s5529_s11 = inlined_call_operand.vmem [shape: f32[2,1,128], index: 11, kind: input, shape index: {}]   ;;  %s5530_s12 = inlined_call_operand.vmem [shape: f32[2,1,128], index: 12, kind: input, shape index: {}]   ;;  %s5531_s13 = inlined_call_operand.vmem [shape: f32[2,1,128], index: 13, kind: input, shape index: {}]   ;;  %s5532_s14 = inlined_call_operand.hbm [shape: bf16[2,128,512], index: 14, kind: input, shape index: {}]   ;;  %s5533_s15 = inlined_call_operand.vmem [shape: f32[2,1,512], index: 15, kind: input, shape index: {}]   ;;  %s5534_s16 = inlined_call_operand.hbm [shape: bf16[2,512,128], index: 16, kind: input, shape index: {}]   ;;  %s5535_s17 = inlined_call_operand.vmem [shape: f32[2,1,128], index: 17, kind: input, shape index: {}]   ;;  %s5536_s18 = inlined_call_operand.hbm [shape: f32[2,8,128], index: 18, kind: output, shape index: {}]  }
   0x1   :  { %5566 = sst [smem:[#allocation28_spill]] %s5518_s0 }
   0x2   :  { %5567 = sst [smem:[#allocation29_spill]] %s5519_s1 }
   0x3   :  { %5568 = sst [smem:[#allocation30_spill]] %s5520_s2 }
   0x4   :  { %5569 = sst [smem:[#allocation31_spill]] %s5521_s3 }
   0x5   :  { %5570 = sst [smem:[#allocation32_spill]] %s5522_s4 }
   0x6   :  { %5571 = sst [smem:[#allocation33_spill]] %s5523_s5 }
   0x7   :  { %5572 = sst [smem:[#allocation34_spill]] %s5524_s6 }
   0x8   :  { %5573 = sst [smem:[#allocation35_spill]] %s5525_s7 }
   0x9   :  { %5574 = sst [smem:[#allocation36_spill]] %s5526_s8 }
   0xa   :  { %5575 = sst [smem:[#allocation37_spill]] %s5527_s9 }
   0xb   :  { %5576 = sst [smem:[#allocation38_spill]] %s5528_s10 }
   0xc   :  { %5577 = sst [smem:[#allocation39_spill]] %s5529_s11 }
   0xd   :  { %5578 = sst [smem:[#allocation40_spill]] %s5530_s12 }
   0xe   :  { %5579 = sst [smem:[#allocation41_spill]] %s5531_s13 }
   0xf   :  { %5580 = sst [smem:[#allocation42_spill]] %s5532_s14 }
  0x10   :  { %5581 = sst [smem:[#allocation43_spill]] %s5533_s15 }
  0x11   :  { %5582 = sst [smem:[#allocation44_spill]] %s5535_s17 }
  0x12   :  { %5583 = sst [smem:[#allocation45_spill]] %s5536_s18 }
  0x13   :  { %23 = vsyncpa [#allocation3], 0 }
  0x14   :  { %24 = vsyncpa [#allocation6], 0 }
  0x15   :  { %25 = vsyncpa [#allocation9], 0 }
  0x16   :  { %26 = vsyncpa [#allocation12], 0 }
  0x17   :  { %27 = vsyncpa [#allocation4], 0  ;;  %s4609_s27 = smov 0   ;;  %s4611_s28 = smov 0  }
  0x18   :  { %s4613_s29 = smov 0   ;;  %s4615_s30 = smov 0  }
  0x19 LB: > { %5584 = sst [smem:[#allocation24_spill]] %s4483_s29  ;;  %s4489_s0 = smov [#allocation2]   ;;  %s4487_s30 = sphi %s4615_s30, %s5646_s30   ;;  %s4483_s29 = sphi %s4613_s29, %s5648_s29   ;;  %s4479_s28 = sphi %s4611_s28, %s5650_s28   ;;  %s4475_s27 = sphi %s4609_s27, %s5649_s27  }
  0x1a   : > { %s509_s19 = sshll.u32 %s4489_s0, 4  ;;  %s4630_s1 = sadd.s32 4294967295, %s4487_s30   ;;  %s510_s19 = int_to_ptr.vmem [resolvable:$true] %s509_s19 }
  0x1b   : > { %p3343_p0 = scmp.ge.s32.totalorder %s4487_s30, 1  ;;  %p5541_p1 = scmp.eq.s32.totalorder %s4630_s1, 0 }
  0x1c   : > { %p497_p2 = scmp.lt.s32.totalorder %s4487_s30, 3  ;;  %s4649_s22 = sadd.s32 1, %s4487_s30  }
  0x1d   : > { %5587 = sst [smem:[#allocation25_spill]] %s4649_s22  ;;  %s5588_s24 = sld [smem:[#allocation28_spill]] }
  0x1e   : > { %p4636_p4 = pnand %p3343_p0, %p497_p2 }
  0x20   : > { %s5585_s20 = scalar_select %p4636_p4, 1, 0 }
  0x21   : > { %p3789_p5 = pneg %p4636_p4 }
  0x23   : > { %p4644_p6 = pnand %p3789_p5, %p5541_p1  ;;  %s4119_s25 = scalar_lea.hbm %s5588_s24, 512 }
  0x24   : > { %p4120_p7 = scmp.ne.s32.totalorder %s5588_s24, %s4119_s25  ;;  %p4126_p11 = scmp.lt.u32.totalorder %s4119_s25, %s5588_s24 }
  0x25   : > { %s5586_s21 = scalar_select %p4644_p6, 1, 0 }
  0x26   : > { %p4659_p8 = pneg %p4644_p6 }
  0x28   : > { %s5589_s18 = scalar_select %p4659_p8, 1, 0 }
  0x29   : > { %p4122_p9 = pnand %p4659_p8, %p4120_p7 }
  0x2b   : > { %p4123_p10 = pneg %p4122_p9 }
  0x2d   : > { %p4128_p12 = pnand %p4126_p11, %p4123_p10 }
  0x2f   : > { %4131 = shalt.err (!%p4128_p12)
}
  0x30   : > { %s4132_s2 = scalar_lea.vmem %s510_s19, 512  ;;  %p4140_p5 = scmp.lt.s32.totalorder %s510_s19, %s510_s19 }
  0x31   : > { %p4133_p13 = scmp.ne.s32.totalorder %s510_s19, %s4132_s2  ;;  %p4141_p3 = scmp.lt.s32.totalorder %s4132_s2, %s4132_s2 }
  0x33   : > { %p4135_p0 = pnand %p4133_p13, %p4659_p8  ;;  %p4142_p1 = por %p4141_p3, %p4140_p5 }
  0x35   : > { %p4136_p2 = pneg %p4135_p0 }
  0x37   : > { %p4143_p4 = pnand %p4142_p1, %p4136_p2 }
  0x39   : > { %4146 = shalt.err (!%p4143_p4)
}
  0x3a   : > { %s5543_s23 = smov 256   ;;  %s5544_s15 = smov 16  }
  0x3b   : > { %3792 = dma.hbm_to_vmem [thread:$0]  (!%p4644_p6), %s5588_s24, 512, %s510_s19, [#allocation3], %s5543_s23, %s5543_s23, %s5544_s15  }
  0x3c   : > { %s215_s26 = ssub.s32 %s4487_s30, %s4649_s22  ;;  %s218_s0 = sadd.s32 1, %s4483_s29 }
  0x3d   : > { %p216_p1 = scmp.eq.s32.totalorder %s215_s26, 0  ;;  %p225_p3 = scmp.ne.s32.totalorder %s4483_s29, %s4479_s28 }
  0x3e   : > { %p226_p4 = scmp.eq.s32.totalorder %s4487_s30, 0  ;;  %p231_p7 = scmp.ne.s32.totalorder %s4479_s28, %s4475_s27 }
  0x3f   : > { %s4687_s2 = scalar_select %p216_p1, %s4483_s29, %s218_s0  }
  0x40   : > { %p227_p9 = por %p226_p4, %p225_p3  ;;  %p5591_p10 = scmp.eq.s32.totalorder %s4630_s1, 0 }
  0x41   : > { %5590 = sst [smem:[#allocation26_spill]] %s4687_s2  ;;  %p3827_p12 = scmp.lt.s32.totalorder %s4487_s30, 2 }
  0x42   : > { %p4691_p11 = por %p5591_p10, %p231_p7  ;;  %s592_s13 = sand.u32 1, %s4487_s30  }
  0x43   : > { %s4698_s12 = sand.u32 1, %s4483_s29   ;;  %p4701_p13 = pnand %p3827_p12, %p227_p9 }
  0x44   : > { %s5592_s9 = scalar_select %p4691_p11, 1, 0 }
  0x45   : > { %s3749_s19 = smul.u32 384, %s4698_s12  ;;  %s5595_s8 = sld [smem:[#allocation36_spill]] }
  0x46   : > { %5593 = sst [smem:[#allocation27_spill]] %s5592_s9  ;;  %s3750_s27 = smul.u32 6144, %s4487_s30 }
  0x47   : > { %s5594_s17 = scalar_select %p4701_p13, 1, 0 }
  0x48   : > { %s596_s23 = scalar_lea.vmem [#allocation13], %s3749_s19  ;;  %s4713_s24 = scalar_lea.sflag [#allocation3], %s592_s13 }
  0x49   : > { %s603_s15 = sshll.u32 %s596_s23, 4  ;;  %p4719_p2 = pneg %p4701_p13  ;;  %s4711_s15 = int_to_ptr.vmem [resolvable:$true] %s603_s15 }
  0x4b   : > { %s4709_s0 = scalar_lea.hbm %s5595_s8, %s3750_s27  ;;  %s4152_s19 = scalar_lea.hbm %s5595_s8, 12288 }
  0x4c   : > { %s4147_s2 = scalar_lea.hbm %s4709_s0, 6144  ;;  %p4153_p3 = scmp.lt.u32.totalorder %s4709_s0, %s5595_s8 }
  0x4d   : > { %p4148_p0 = scmp.ne.s32.totalorder %s4709_s0, %s4147_s2  ;;  %p4154_p4 = scmp.lt.u32.totalorder %s4152_s19, %s4147_s2 }
  0x4e   : > { %s5596_s29 = scalar_select %p4719_p2, 1, 0 }
  0x4f   : > { %p4150_p5 = pnand %p4719_p2, %p4148_p0  ;;  %p4155_p7 = por %p4154_p4, %p4153_p3 }
  0x50   : > { %p4156_p9 = scmp.lt.u32.totalorder %s4147_s2, %s4709_s0 }
  0x51   : > { %p4151_p1 = pneg %p4150_p5 }
  0x52   : > { %p4157_p10 = por %p4156_p9, %p4155_p7 }
  0x54   : > { %p4158_p12 = pnand %p4157_p10, %p4151_p1 }
  0x56   : > { %4161 = shalt.err (!%p4158_p12)
}
  0x57   : > { %s4162_s13 = scalar_lea.vmem %s4711_s15, 6144  ;;  %s4492_s27 = smov [#allocation13]  }
  0x58   : > { %p4163_p0 = scmp.ne.s32.totalorder %s4711_s15, %s4162_s13  ;;  %s4167_s25 = sshll.u32 %s4492_s27, 4  ;;  %s4168_s25 = int_to_ptr.vmem [resolvable:$false] %s4167_s25 }
  0x59   : > { %s4169_s23 = scalar_lea.vmem %s4168_s25, 12288  ;;  %p4170_p6 = scmp.lt.s32.totalorder %s4711_s15, %s4168_s25 }
  0x5a   : > { %p4165_p5 = pnand %p4163_p0, %p4719_p2  ;;  %p4171_p8 = scmp.lt.s32.totalorder %s4169_s23, %s4162_s13 }
  0x5c   : > { %p4166_p11 = pneg %p4165_p5  ;;  %p4172_p3 = por %p4171_p8, %p4170_p6 }
  0x5e   : > { %p4173_p4 = pnand %p4172_p3, %p4166_p11 }
  0x60   : > { %4176 = shalt.err (!%p4173_p4)
}
  0x61   : > { %s4493_s2 = smov 384   ;;  %s4494_s19 = smov 24  }
  0x62   : > { %3811 = dma.hbm_to_vmem [thread:$0]  (!%p4701_p13), %s4709_s0, 6144, %s4711_s15, %s4713_s24, %s4493_s2, %s4493_s2, %s4494_s19  }
  0x63   : > { %s3352_s26 = sshll.u32 %s4698_s12, 7  ;;  %s3520_s27 = sshll.u32 %s4487_s30, 11 }
  0x64   : > { %s5597_s10 = sld [smem:[#allocation38_spill]]  ;;  %s624_s25 = scalar_lea.vmem [#allocation14], %s3352_s26 }
  0x65   : > { %s631_s23 = sshll.u32 %s624_s25, 4  ;;  %s4750_s23 = int_to_ptr.vmem [resolvable:$true] %s631_s23 }
  0x6a   : > { %s4748_s13 = scalar_lea.hbm %s5597_s10, %s3520_s27  ;;  %s4182_s2 = scalar_lea.hbm %s5597_s10, 4096 }
  0x6b   : > { %s4177_s11 = scalar_lea.hbm %s4748_s13, 2048  ;;  %p4183_p1 = scmp.lt.u32.totalorder %s4748_s13, %s5597_s10 }
  0x6c   : > { %p4178_p6 = scmp.ne.s32.totalorder %s4748_s13, %s4177_s11  ;;  %p4184_p7 = scmp.lt.u32.totalorder %s4182_s2, %s4177_s11 }
  0x6d   : > { %p4186_p10 = scmp.lt.u32.totalorder %s4177_s11, %s4748_s13 }
  0x6e   : > { %p4180_p8 = pnand %p4178_p6, %p4719_p2  ;;  %p4185_p9 = por %p4184_p7, %p4183_p1 }
  0x70   : > { %p4181_p11 = pneg %p4180_p8  ;;  %p4187_p12 = por %p4186_p10, %p4185_p9 }
  0x72   : > { %p4188_p0 = pnand %p4187_p12, %p4181_p11 }
  0x74   : > { %4191 = shalt.err (!%p4188_p0)
}
  0x75   : > { %s4192_s19 = scalar_lea.vmem %s4750_s23, 2048  ;;  %s4495_s26 = smov [#allocation14]  }
  0x76   : > { %p4193_p5 = scmp.ne.s32.totalorder %s4750_s23, %s4192_s19  ;;  %s4197_s27 = sshll.u32 %s4495_s26, 4  ;;  %s4198_s27 = int_to_ptr.vmem [resolvable:$false] %s4197_s27 }
  0x77   : > { %s4199_s25 = scalar_lea.vmem %s4198_s27, 4096  ;;  %p4200_p6 = scmp.lt.s32.totalorder %s4750_s23, %s4198_s27 }
  0x78   : > { %p4195_p3 = pnand %p4193_p5, %p4719_p2  ;;  %p4201_p8 = scmp.lt.s32.totalorder %s4199_s25, %s4192_s19 }
  0x7a   : > { %p4196_p4 = pneg %p4195_p3  ;;  %p4202_p1 = por %p4201_p8, %p4200_p6 }
  0x7c   : > { %p4203_p7 = pnand %p4202_p1, %p4196_p4 }
  0x7e   : > { %4206 = shalt.err (!%p4203_p7)
}
  0x7f   : > { %s5556_s11 = smov 64   ;;  %s5557_s15 = smov 4  }
  0x80   : > { %3814 = dma.hbm_to_vmem [thread:$0]  (!%p4701_p13), %s4748_s13, 2048, %s4750_s23, %s4713_s24, %s5556_s11, %s5556_s11, %s5557_s15  }
  0x81   : > { %s4498_s0 = smov [#allocation5]   ;;  %s5598_s19 = sld [smem:[#allocation29_spill]] }
  0x82   : > { %s522_s2 = sshll.u32 %s4498_s0, 4  ;;  %p5599_p9 = scmp.ne.s32.totalorder %s5589_s18, 0  ;;  %s523_s2 = int_to_ptr.vmem [resolvable:$true] %s522_s2 }
  0x87   : > { %s4207_s26 = scalar_lea.hbm %s5598_s19, 3072 }
  0x88   : > { %p4208_p11 = scmp.ne.s32.totalorder %s5598_s19, %s4207_s26  ;;  %p4214_p0 = scmp.lt.u32.totalorder %s4207_s26, %s5598_s19 }
  0x8a   : > { %p4210_p10 = pnand %p4208_p11, %p5599_p9 }
  0x8c   : > { %p4211_p12 = pneg %p4210_p10 }
  0x8e   : > { %p4216_p5 = pnand %p4214_p0, %p4211_p12 }
  0x90   : > { %4219 = shalt.err (!%p4216_p5)
}
  0x91   : > { %s4220_s13 = scalar_lea.vmem %s523_s2, 3072  ;;  %p4228_p8 = scmp.lt.s32.totalorder %s523_s2, %s523_s2 }
  0x92   : > { %p4221_p3 = scmp.ne.s32.totalorder %s523_s2, %s4220_s13  ;;  %p4229_p1 = scmp.lt.s32.totalorder %s4220_s13, %s4220_s13 }
  0x94   : > { %p4223_p4 = pnand %p4221_p3, %p5599_p9  ;;  %p4230_p7 = por %p4229_p1, %p4228_p8 }
  0x96   : > { %p4224_p6 = pneg %p4223_p4 }
  0x98   : > { %p4231_p13 = pnand %p4230_p7, %p4224_p6 }
  0x9a   : > { %4234 = shalt.err (!%p4231_p13)
}
  0x9b   : > { %s4499_s23 = smov 128   ;;  %s4500_s0 = smov 8  }
  0x9c   : > { %p5600_p11 = scmp.ne.s32.totalorder %s5586_s21, 0  ;;  %s4501_s8 = smov [#allocation8]  }
  0x9d   : > { %s547_s22 = sshll.u32 %s4501_s8, 4  ;;  %s5563_s26 = sshll.u32 %s4698_s12, 8  ;;  %s548_s22 = int_to_ptr.vmem [resolvable:$true] %s547_s22 }
  0x9e   : > { %3795 = dma.hbm_to_vmem [thread:$0]  (!%p5600_p11), %s5598_s19, 3072, %s523_s2, [#allocation6], %s4499_s23, %s4499_s23, %s4500_s0  }
  0x9f   : > { %s5601_s3 = sld [smem:[#allocation31_spill]] }
  0xa5   : > { %s4235_s13 = scalar_lea.hbm %s5601_s3, 16 }
  0xa6   : > { %p4236_p13 = scmp.ne.s32.totalorder %s5601_s3, %s4235_s13  ;;  %p4242_p0 = scmp.lt.u32.totalorder %s4235_s13, %s5601_s3 }
  0xa8   : > { %p4238_p10 = pnand %p4236_p13, %p5599_p9 }
  0xaa   : > { %p4239_p12 = pneg %p4238_p10 }
  0xac   : > { %p4244_p5 = pnand %p4242_p0, %p4239_p12 }
  0xae   : > { %4247 = shalt.err (!%p4244_p5)
}
  0xaf   : > { %s4248_s2 = scalar_lea.vmem %s548_s22, 16  ;;  %s4255_s23 = scalar_lea.vmem %s548_s22, 32 }
  0xb0   : > { %p4249_p3 = scmp.ne.s32.totalorder %s548_s22, %s4248_s2  ;;  %p4256_p8 = scmp.lt.s32.totalorder %s548_s22, %s548_s22 }
  0xb1   : > { %p4257_p1 = scmp.lt.s32.totalorder %s4255_s23, %s4248_s2 }
  0xb2   : > { %p4251_p4 = pnand %p4249_p3, %p5599_p9 }
  0xb3   : > { %p4258_p7 = por %p4257_p1, %p4256_p8 }
  0xb4   : > { %p4252_p6 = pneg %p4251_p4 }
  0xb6   : > { %p4259_p2 = pnand %p4258_p7, %p4252_p6 }
  0xb8   : > { %4262 = shalt.err (!%p4259_p2)
}
  0xb9   : > { %3801 = dma.hbm_to_vmem [thread:$0]  (!%p5600_p11), %s5601_s3, 16, %s548_s22, [#allocation9]  }
  0xba   : > { %s5564_s6 = sshll.u32 %s4487_s30, 12  ;;  %s663_s9 = scalar_lea.vmem [#allocation15], %s5563_s26 }
  0xbb   : > { %s670_s0 = sshll.u32 %s663_s9, 4  ;;  %s5602_s14 = sld [smem:[#allocation42_spill]]  ;;  %s4824_s0 = int_to_ptr.vmem [resolvable:$true] %s670_s0 }
  0xbc   : > { %p5603_p13 = scmp.ne.s32.totalorder %s5596_s29, 0 }
  0xc1   : > { %s4822_s8 = scalar_lea.hbm %s5602_s14, %s5564_s6  ;;  %s4268_s13 = scalar_lea.hbm %s5602_s14, 8192 }
  0xc2   : > { %s4263_s27 = scalar_lea.hbm %s4822_s8, 4096  ;;  %p4269_p0 = scmp.lt.u32.totalorder %s4822_s8, %s5602_s14 }
  0xc3   : > { %p4264_p2 = scmp.ne.s32.totalorder %s4822_s8, %s4263_s27  ;;  %p4270_p5 = scmp.lt.u32.totalorder %s4268_s13, %s4263_s27 }
  0xc4   : > { %p4272_p4 = scmp.lt.u32.totalorder %s4263_s27, %s4822_s8 }
  0xc5   : > { %p4266_p10 = pnand %p4264_p2, %p5603_p13  ;;  %p4271_p3 = por %p4270_p5, %p4269_p0 }
  0xc7   : > { %p4267_p12 = pneg %p4266_p10  ;;  %p4273_p6 = por %p4272_p4, %p4271_p3 }
  0xc9   : > { %p4274_p8 = pnand %p4273_p6, %p4267_p12 }
  0xcb   : > { %4277 = shalt.err (!%p4274_p8)
}
  0xcc   : > { %s4278_s11 = scalar_lea.vmem %s4824_s0, 4096  ;;  %s4502_s15 = smov [#allocation15]  }
  0xcd   : > { %p4279_p1 = scmp.ne.s32.totalorder %s4824_s0, %s4278_s11  ;;  %s4283_s9 = sshll.u32 %s4502_s15, 4  ;;  %s4284_s9 = int_to_ptr.vmem [resolvable:$false] %s4283_s9 }
  0xce   : > { %s4285_s7 = scalar_lea.vmem %s4284_s9, 8192  ;;  %p4286_p10 = scmp.lt.s32.totalorder %s4824_s0, %s4284_s9 }
  0xcf   : > { %p4281_p7 = pnand %p4279_p1, %p5603_p13  ;;  %p4287_p11 = scmp.lt.s32.totalorder %s4285_s7, %s4278_s11 }
  0xd1   : > { %p4282_p2 = pneg %p4281_p7  ;;  %p4288_p0 = por %p4287_p11, %p4286_p10 }
  0xd3   : > { %p4289_p5 = pnand %p4288_p0, %p4282_p2 }
  0xd5   : > { %4292 = shalt.err (!%p4289_p5)
}
  0xd6   : > { %p5604_p12 = scmp.ne.s32.totalorder %s5594_s17, 0  ;;  %s5605_s10 = smov 16  }
  0xd7   : > { %s5606_s27 = smov 256   ;;  %s4503_s22 = smov [#allocation7]  }
  0xd8   : > { %3817 = dma.hbm_to_vmem [thread:$0]  (!%p5604_p12), %s4822_s8, 4096, %s4824_s0, %s4713_s24, %s5606_s27, %s5606_s27, %s5605_s10  }
  0xd9   : > { %s536_s25 = sshll.u32 %s4503_s22, 4  ;;  %s4504_s13 = smov [#allocation10]   ;;  %s537_s25 = int_to_ptr.vmem [resolvable:$true] %s536_s25 }
  0xda   : > { %s558_s2 = sshll.u32 %s4504_s13, 4  ;;  %s5607_s15 = sld [smem:[#allocation30_spill]]  ;;  %s4851_s2 = int_to_ptr.vmem [resolvable:$true] %s558_s2 }
  0xe0   : > { %s4293_s9 = scalar_lea.hbm %s5607_s15, 128 }
  0xe1   : > { %p4294_p11 = scmp.ne.s32.totalorder %s5607_s15, %s4293_s9  ;;  %p4300_p6 = scmp.lt.u32.totalorder %s4293_s9, %s5607_s15 }
  0xe3   : > { %p4296_p3 = pnand %p4294_p11, %p5599_p9 }
  0xe5   : > { %p4297_p4 = pneg %p4296_p3 }
  0xe7   : > { %p4302_p8 = pnand %p4300_p6, %p4297_p4 }
  0xe9   : > { %4305 = shalt.err (!%p4302_p8)
}
  0xea   : > { %s4306_s8 = scalar_lea.vmem %s537_s25, 128  ;;  %p4314_p10 = scmp.lt.s32.totalorder %s537_s25, %s537_s25 }
  0xeb   : > { %p4307_p1 = scmp.ne.s32.totalorder %s537_s25, %s4306_s8  ;;  %p4315_p0 = scmp.lt.s32.totalorder %s4306_s8, %s4306_s8 }
  0xed   : > { %p4309_p7 = pnand %p4307_p1, %p5599_p9  ;;  %p4316_p5 = por %p4315_p0, %p4314_p10 }
  0xef   : > { %p4310_p2 = pneg %p4309_p7 }
  0xf1   : > { %p4317_p12 = pnand %p4316_p5, %p4310_p2 }
  0xf3   : > { %4320 = shalt.err (!%p4317_p12)
}
  0xf4   : > { %p5608_p11 = scmp.ne.s32.totalorder %s5586_s21, 0  ;;  %s5609_s4 = sld [smem:[#allocation32_spill]] }
  0xf6   : > { %3798 = dma.hbm_to_vmem [thread:$0]  (!%p5608_p11), %s5607_s15, 128, %s537_s25, [#allocation6]  }
  0xfa   : > { %s4321_s22 = scalar_lea.hbm %s5609_s4, 16 }
  0xfb   : > { %p4322_p3 = scmp.ne.s32.totalorder %s5609_s4, %s4321_s22  ;;  %p4328_p12 = scmp.lt.u32.totalorder %s4321_s22, %s5609_s4 }
  0xfd   : > { %p4324_p4 = pnand %p4322_p3, %p5599_p9 }
  0xff   : > { %p4325_p6 = pneg %p4324_p4 }
 0x101   : > { %p4330_p8 = pnand %p4328_p12, %p4325_p6 }
 0x103   : > { %4333 = shalt.err (!%p4330_p8)
}
 0x104   : > { %s4334_s25 = scalar_lea.vmem %s4851_s2, 16  ;;  %s4341_s7 = scalar_lea.vmem %s4851_s2, 32 }
 0x105   : > { %p4335_p1 = scmp.ne.s32.totalorder %s4851_s2, %s4334_s25  ;;  %p4342_p10 = scmp.lt.s32.totalorder %s4851_s2, %s4851_s2 }
 0x106   : > { %p4343_p0 = scmp.lt.s32.totalorder %s4341_s7, %s4334_s25 }
 0x107   : > { %p4337_p7 = pnand %p4335_p1, %p5599_p9 }
 0x108   : > { %p4344_p5 = por %p4343_p0, %p4342_p10 }
 0x109   : > { %p4338_p2 = pneg %p4337_p7 }
 0x10b   : > { %p4345_p3 = pnand %p4344_p5, %p4338_p2 }
 0x10d   : > { %4348 = shalt.err (!%p4345_p3)
}
 0x10e   : > { %3804 = dma.hbm_to_vmem [thread:$0]  (!%p5608_p11), %s5609_s4, 16, %s4851_s2, [#allocation9]  }
 0x10f   : > { %s4505_s26 = smov [#allocation11]   ;;  %s5610_s6 = sshll.u32 %s4487_s30, 12 }
 0x110   : > { %s569_s10 = sshll.u32 %s4505_s26, 4  ;;  %s4900_s13 = scalar_lea.hbm %s5534_s16, %s5610_s6  ;;  %s570_s10 = int_to_ptr.vmem [resolvable:$true] %s569_s10 }
 0x111   : > { %s5611_s23 = sshll.u32 %s4698_s12, 8  ;;  %s5612_s5 = sld [smem:[#allocation33_spill]] }
 0x112   : > { %s691_s11 = scalar_lea.vmem [#allocation16], %s5611_s23 }
 0x113   : > { %s698_s9 = sshll.u32 %s691_s11, 4  ;;  %s4922_s9 = int_to_ptr.vmem [resolvable:$true] %s698_s9 }
 0x117   : > { %s4349_s0 = scalar_lea.hbm %s5612_s5, 16 }
 0x118   : > { %p4350_p4 = scmp.ne.s32.totalorder %s5612_s5, %s4349_s0  ;;  %p4356_p8 = scmp.lt.u32.totalorder %s4349_s0, %s5612_s5 }
 0x11a   : > { %p4352_p6 = pnand %p4350_p4, %p5599_p9 }
 0x11c   : > { %p4353_p12 = pneg %p4352_p6 }
 0x11e   : > { %p4358_p1 = pnand %p4356_p8, %p4353_p12 }
 0x120   : > { %4361 = shalt.err (!%p4358_p1)
}
 0x121   : > { %s4362_s12 = scalar_lea.vmem %s570_s10, 16  ;;  %s4369_s26 = scalar_lea.vmem %s570_s10, 32 }
 0x122   : > { %p4363_p7 = scmp.ne.s32.totalorder %s570_s10, %s4362_s12  ;;  %p4370_p0 = scmp.lt.s32.totalorder %s570_s10, %s570_s10 }
 0x123   : > { %p4371_p5 = scmp.lt.s32.totalorder %s4369_s26, %s4362_s12 }
 0x124   : > { %p4365_p2 = pnand %p4363_p7, %p5599_p9 }
 0x125   : > { %p4372_p3 = por %p4371_p5, %p4370_p0 }
 0x126   : > { %p4366_p10 = pneg %p4365_p2 }
 0x128   : > { %p4373_p13 = pnand %p4372_p3, %p4366_p10 }
 0x12a   : > { %4376 = shalt.err (!%p4373_p13)
}
 0x12b   : > { %3807 = dma.hbm_to_vmem [thread:$0]  (!%p5608_p11), %s5612_s5, 16, %s570_s10, [#allocation12]  }
 0x12c   : > { %s4377_s18 = scalar_lea.hbm %s4900_s13, 4096  ;;  %p5613_p4 = scmp.ne.s32.totalorder %s5596_s29, 0 }
 0x12d   : > { %p4378_p9 = scmp.ne.s32.totalorder %s4900_s13, %s4377_s18  ;;  %s4382_s21 = scalar_lea.hbm %s5534_s16, 8192 }
 0x12e   : > { %p4383_p13 = scmp.lt.u32.totalorder %s4900_s13, %s5534_s16  ;;  %p4384_p8 = scmp.lt.u32.totalorder %s4382_s21, %s4377_s18 }
 0x12f   : > { %p4380_p6 = pnand %p4378_p9, %p5613_p4  ;;  %p4386_p7 = scmp.lt.u32.totalorder %s4377_s18, %s4900_s13 }
 0x130   : > { %p4385_p1 = por %p4384_p8, %p4383_p13 }
 0x131   : > { %p4381_p12 = pneg %p4380_p6 }
 0x132   : > { %p4387_p2 = por %p4386_p7, %p4385_p1 }
 0x134   : > { %p4388_p11 = pnand %p4387_p2, %p4381_p12 }
 0x136   : > { %4391 = shalt.err (!%p4388_p11)
}
 0x137   : > { %s4392_s10 = scalar_lea.vmem %s4922_s9, 4096  ;;  %s4506_s25 = smov [#allocation16]  }
 0x138   : > { %p4393_p10 = scmp.ne.s32.totalorder %s4922_s9, %s4392_s10  ;;  %s4397_s7 = sshll.u32 %s4506_s25, 4  ;;  %s4398_s7 = int_to_ptr.vmem [resolvable:$false] %s4397_s7 }
 0x139   : > { %s4399_s0 = scalar_lea.vmem %s4398_s7, 8192  ;;  %p4400_p3 = scmp.lt.s32.totalorder %s4922_s9, %s4398_s7 }
 0x13a   : > { %p4395_p0 = pnand %p4393_p10, %p5613_p4  ;;  %p4401_p9 = scmp.lt.s32.totalorder %s4399_s0, %s4392_s10 }
 0x13c   : > { %p4396_p5 = pneg %p4395_p0  ;;  %p4402_p6 = por %p4401_p9, %p4400_p3 }
 0x13e   : > { %p4403_p13 = pnand %p4402_p6, %p4396_p5 }
 0x140   : > { %4406 = shalt.err (!%p4403_p13)
}
 0x141   : > { %p5614_p12 = scmp.ne.s32.totalorder %s5594_s17, 0  ;;  %s5615_s8 = smov 4  }
 0x142   : > { %s5616_s30 = smov 64   ;;  %p5617_p4 = scmp.ne.s32.totalorder %s5585_s20, 0 }
 0x143   : > { %3820 = dma.hbm_to_vmem [thread:$0]  (!%p5614_p12), %s4900_s13, 4096, %s4922_s9, %s4713_s24, %s5616_s30, %s5616_s30, %s5615_s8  }
 0x144   : > { %716 = sbr.rel (%p5617_p4) target bundleno = 3830 (0xef6), region = 92  ;;  %p5618_p8 = scmp.eq.s32.totalorder (!%p5617_p4), %s4630_s1, 0 }
 0x14b   : > { %4450 = dma.done.wait (%p5618_p8), [#allocation3], 512   ;;  %p5619_p1 = pmov %p5618_p8 }
 0x14d   : > { %4452 = vsyncadd (%p5619_p1), [#allocation3], 4294966784  ;;  %p5620_p7 = pmov %p5619_p1 }
 0x14e   : > { %p5621_p2 = pmov %p5619_p1 }
 0x14f   : > { %4454 = dma.done.wait (%p5620_p7), [#allocation6], 3200  }
 0x150   : > { %4456 = vsyncadd (%p5621_p2), [#allocation6], 4294964096  ;;  %p5622_p11 = pmov %p5619_p1 }
 0x151   : > { %p5623_p10 = pmov %p5619_p1 }
 0x152   : > { %4458 = dma.done.wait (%p5622_p11), [#allocation9], 32  }
 0x153   : > { %4460 = vsyncadd (%p5623_p10), [#allocation9], 4294967264  ;;  %p5624_p0 = pmov %p5619_p1 }
 0x155   : > { %4462 = dma.done.wait (%p5624_p0), [#allocation12], 16   ;;  %p5625_p5 = pmov %p5624_p0 }
 0x156   : > { %s5626_s29 = sld [smem:[#allocation27_spill]]  ;;  %s742_s20 = sand.u32 1, %s4630_s1  }
 0x157   : > { %4464 = vsyncadd (%p5625_p5), [#allocation12], 4294967280  ;;  %s744_s24 = sand.u32 1, %s4479_s28   ;;  %s743_s13 = scalar_lea.sflag [#allocation3], %s742_s20 }
 0x158   : > { %s3751_s17 = smul.u32 384, %s744_s24 }
 0x15a   : > { %s4969_s9 = scalar_lea.vmem [#allocation13], %s3751_s17 }
 0x15c   : > { %p5627_p3 = scmp.ne.s32.totalorder %s5626_s29, 0 }
 0x15e   : > { %4466 = dma.done.wait (%p5627_p3), %s743_s13, 16384  }
 0x15f   : > { %4468 = vsyncadd (%p5627_p3), %s743_s13, 4294950912  ;;  %s3368_s2 = sshll.u32 %s744_s24, 7  ;;  %s3369_s12 = sshll.u32 %s744_s24, 8 }
 0x160   : > { %p862_p9 = scmp.lt.s32.totalorder %s4630_s1, 1  ;;  %s5630_s0 = sld [smem:[#allocation39_spill]] }
 0x161   : > { %s5631_s20 = sld [smem:[#allocation40_spill]]  ;;  %s5632_s3 = sld [smem:[#allocation41_spill]] }
 0x162   : > { %s4977_s26 = scalar_select %p862_p9, %s4630_s1, 1 }
 0x163   : > { %s5633_s18 = sld [smem:[#allocation37_spill]]  ;;  %s5634_s11 = sld [smem:[#allocation43_spill]] }
 0x164   : > { %s3752_s10 = smul.u32 6, %s4977_s26  ;;  %s3371_s22 = sshll.u32 %s4977_s26, 2 }
 0x165   : > { %s5015_s29 = scalar_lea.vmem [#allocation14], %s3368_s2  ;;  %s5019_s17 = scalar_lea.vmem [#allocation16], %s3369_s12 }
 0x166   : > { %s874_s8 = scalar_lea.vmem %s5630_s0, %s4977_s26  ;;  %s5635_s0 = sld [smem:[#allocation44_spill]] }
 0x167   : > { %s877_s24 = scalar_lea.vmem %s5631_s20, %s4977_s26  ;;  %s880_s6 = scalar_lea.vmem %s5632_s3, %s4977_s26 }
 0x168   : > { %s5017_s20 = scalar_lea.vmem [#allocation15], %s3369_s12  ;;  %p5636_p6 = scmp.ne.s32.totalorder %s4630_s1, 0 }
 0x169   : > { %s5003_s27 = scalar_lea.vmem %s5633_s18, %s3752_s10  ;;  %s5009_s14 = scalar_lea.vmem %s5634_s11, %s3371_s22  ;;  %v897_v0 = vld [vmem:[#allocation5] sm:$0xff] (!%p5636_p6)  ;;  %v898_v1 = vld [vmem:[#allocation5 + $0x8] sm:$0xff] (!%p5636_p6)  ;;  %v899_v2 = vld [vmem:[#allocation5 + $0x10] sm:$0xff] (!%p5636_p6)  ;;  %v4507_v3 = vmov (!%p5636_p6), 0.0|0.0   ;;  %vm921_vm0 = vcmask (!%p5636_p6), 523264  }
 0x16a   : > { %892 = sbr.rel (%p5636_p6) target bundleno = 941 (0x3ad), region = 136  ;;  %3689 = vmatprep.subr.bf16.mxu0 (!%p5636_p6), %v4507_v3  ;;  %v3690_v4 = vpack.c.bf16 (!%p5636_p6), %v898_v1, %v897_v0  ;;  %3725 = vmatprep.subr.bf16.mxu1 (!%p5636_p6), %v4507_v3  ;;  %v900_v5 = vld [vmem:[#allocation5 + $0x18] sm:$0xff] (!%p5636_p6)  ;;  %v901_v7 = vld [vmem:[#allocation5 + $0x20] sm:$0xff] (!%p5636_p6)  ;;  %v902_v8 = vld [vmem:[#allocation5 + $0x28] sm:$0xff] (!%p5636_p6) }
 0x16b   : > { %v3693_v6 = vpack.c.bf16 (!%p5636_p6), %v900_v5, %v899_v2  ;;  %v3696_v9 = vpack.c.bf16 (!%p5636_p6), %v902_v8, %v901_v7  ;;  %v903_v10 = vld [vmem:[#allocation5 + $0x30] sm:$0xff] (!%p5636_p6)  ;;  %v904_v11 = vld [vmem:[#allocation5 + $0x38] sm:$0xff] (!%p5636_p6)  ;;  %v894_v12 = vld [vmem:[#allocation2 + $0x8] sm:$0xff] (!%p5636_p6) }
 0x16c   : > { %s887_s30 = scalar_lea.vmem %s5635_s0, %s4977_s26  ;;  %3691 = vmatpush1.bf16.msra.mxu0 (!%p5636_p6), %v3690_v4  ;;  %3737 = vmatpush1.bf16.msra.mxu1 (!%p5636_p6), %v3690_v4  ;;  %v896_v13 = vld [vmem:[#allocation2 + $0x18] sm:$0xff] (!%p5636_p6)  ;;  %v3699_v14 = vpack.c.bf16 (!%p5636_p6), %v904_v11, %v903_v10  ;;  %v905_v15 = vld [vmem:[#allocation5 + $0x40] sm:$0xff] (!%p5636_p6)  ;;  %v906_v16 = vld [vmem:[#allocation5 + $0x48] sm:$0xff] (!%p5636_p6) }
 0x16d   : > { %3692 = vmatprep.subr.bf16.mxu0 (!%p5636_p6), %v4507_v3  ;;  %3726 = vmatprep.subr.bf16.mxu1 (!%p5636_p6), %v4507_v3  ;;  %v3702_v17 = vpack.c.bf16 (!%p5636_p6), %v906_v16, %v905_v15  ;;  %v907_v18 = vld [vmem:[#allocation5 + $0x50] sm:$0xff] (!%p5636_p6)  ;;  %v908_v19 = vld [vmem:[#allocation5 + $0x58] sm:$0xff] (!%p5636_p6)  ;;  %v909_v21 = vld [vmem:[#allocation5 + $0x60] sm:$0xff] (!%p5636_p6) }
 0x16e   : > { %3373 = vmatprep.mubr.msk.f32.mxu0 (!%p5636_p6), %vm921_vm0, %v894_v12  ;;  %3374 = vmatprep.mubr.msk.f32.mxu1 (!%p5636_p6), %vm921_vm0, %v896_v13  ;;  %v3705_v20 = vpack.c.bf16 (!%p5636_p6), %v908_v19, %v907_v18  ;;  %v910_v22 = vld [vmem:[#allocation5 + $0x68] sm:$0xff] (!%p5636_p6)  ;;  %v911_v24 = vld [vmem:[#allocation5 + $0x70] sm:$0xff] (!%p5636_p6)  ;;  %v912_v25 = vld [vmem:[#allocation5 + $0x78] sm:$0xff] (!%p5636_p6) }
 0x16f   : > { %v3708_v23 = vpack.c.bf16 (!%p5636_p6), %v910_v22, %v909_v21  ;;  %v3711_v26 = vpack.c.bf16 (!%p5636_p6), %v912_v25, %v911_v24  ;;  %v913_v27 = vld [vmem:[#allocation5 + $0x80] sm:$0xff] (!%p5636_p6)  ;;  %v914_v28 = vld [vmem:[#allocation5 + $0x88] sm:$0xff] (!%p5636_p6)  ;;  %v915_v30 = vld [vmem:[#allocation5 + $0x90] sm:$0xff] (!%p5636_p6) }
 0x170   : > { %3694 = vmatpush1.bf16.msra.mxu0 (!%p5636_p6), %v3693_v6  ;;  %3738 = vmatpush1.bf16.msra.mxu1 (!%p5636_p6), %v3693_v6  ;;  %v3714_v29 = vpack.c.bf16 (!%p5636_p6), %v914_v28, %v913_v27  ;;  %v916_v31 = vld [vmem:[#allocation5 + $0x98] sm:$0xff] (!%p5636_p6)  ;;  %v917_v33 = vld [vmem:[#allocation5 + $0xa0] sm:$0xff] (!%p5636_p6)  ;;  %v918_v34 = vld [vmem:[#allocation5 + $0xa8] sm:$0xff] (!%p5636_p6) }
 0x171   : > { %3695 = vmatprep.subr.bf16.mxu0 %v4507_v3  ;;  %3727 = vmatprep.subr.bf16.mxu1 %v4507_v3  ;;  %v3717_v32 = vpack.c.bf16 %v916_v31, %v915_v30  ;;  %v3720_v35 = vpack.c.bf16 %v918_v34, %v917_v33  ;;  %v919_v36 = vld [vmem:[#allocation5 + $0xb0] sm:$0xff]  ;;  %v920_v37 = vld [vmem:[#allocation5 + $0xb8] sm:$0xff]  ;;  %v893_v39 = vld [vmem:[#allocation2] sm:$0xff] }
 0x172   : > { %v3723_v38 = vpack.c.bf16 %v920_v37, %v919_v36  ;;  %v895_v40 = vld [vmem:[#allocation2 + $0x10] sm:$0xff]  ;;  %v1003_v41 = vld [vmem:[#allocation7] sm:$0xff]  ;;  %v3375_v63 = vld [vmem:[#allocation8] ss:$0 sm:$0xff] }
 0x173   : > { %v3376_v1 = vld [vmem:[#allocation10] ss:$0 sm:$0xff] }
 0x174   : > { %3697 = vmatpush1.bf16.msra.mxu0 %v3696_v9  ;;  %3739 = vmatpush1.bf16.msra.mxu1 %v3696_v9 }
 0x175   : > { %3698 = vmatprep.subr.bf16.mxu0 %v4507_v3  ;;  %3728 = vmatprep.subr.bf16.mxu1 %v4507_v3 }
 0x178   : > { %3700 = vmatpush1.bf16.msra.mxu0 %v3699_v14  ;;  %3740 = vmatpush1.bf16.msra.mxu1 %v3699_v14 }
 0x179   : > { %3701 = vmatprep.subr.bf16.mxu0 %v4507_v3  ;;  %3729 = vmatprep.subr.bf16.mxu1 %v4507_v3 }
 0x17c   : > { %3703 = vmatpush1.bf16.msra.mxu0 %v3702_v17  ;;  %3741 = vmatpush1.bf16.msra.mxu1 %v3702_v17 }
 0x17d   : > { %3704 = vmatprep.subr.bf16.mxu0 %v4507_v3  ;;  %3730 = vmatprep.subr.bf16.mxu1 %v4507_v3 }
 0x180   : > { %3706 = vmatpush1.bf16.msra.mxu0 %v3705_v20  ;;  %3742 = vmatpush1.bf16.msra.mxu1 %v3705_v20 }
 0x181   : > { %3707 = vmatprep.subr.bf16.mxu0 %v4507_v3  ;;  %3731 = vmatprep.subr.bf16.mxu1 %v4507_v3 }
 0x184   : > { %3709 = vmatpush1.bf16.msra.mxu0 %v3708_v23  ;;  %3743 = vmatpush1.bf16.msra.mxu1 %v3708_v23 }
 0x185   : > { %3710 = vmatprep.subr.bf16.mxu0 %v4507_v3  ;;  %3732 = vmatprep.subr.bf16.mxu1 %v4507_v3 }
 0x188   : > { %3712 = vmatpush1.bf16.msra.mxu0 %v3711_v26  ;;  %3744 = vmatpush1.bf16.msra.mxu1 %v3711_v26 }
 0x189   : > { %3713 = vmatprep.subr.bf16.mxu0 %v4507_v3  ;;  %3733 = vmatprep.subr.bf16.mxu1 %v4507_v3 }
 0x18c   : > { %3715 = vmatpush1.bf16.msra.mxu0 %v3714_v29  ;;  %3745 = vmatpush1.bf16.msra.mxu1 %v3714_v29 }
 0x18d   : > { %3716 = vmatprep.subr.bf16.mxu0 %v4507_v3  ;;  %3734 = vmatprep.subr.bf16.mxu1 %v4507_v3 }
 0x190   : > { %3718 = vmatpush1.bf16.msra.mxu0 %v3717_v32  ;;  %3746 = vmatpush1.bf16.msra.mxu1 %v3717_v32 }
 0x191   : > { %3719 = vmatprep.subr.bf16.mxu0 %v4507_v3  ;;  %3735 = vmatprep.subr.bf16.mxu1 %v4507_v3 }
 0x194   : > { %3721 = vmatpush1.bf16.msra.mxu0 %v3720_v35  ;;  %3747 = vmatpush1.bf16.msra.mxu1 %v3720_v35 }
 0x195   : > { %3722 = vmatprep.subr.bf16.mxu0 %v4507_v3  ;;  %3736 = vmatprep.subr.bf16.mxu1 %v4507_v3 }
 0x198   : > { %3724 = vmatpush1.bf16.msra.mxu0 %v3723_v38  ;;  %3748 = vmatpush1.bf16.msra.mxu1 %v3723_v38 }
 0x19b   : > { %993 = vmatmul.mubr.f32.vlgmr.msra.gmra.mrb[0].mxu0 %v893_v39  ;;  %998 = vmatmul.mubr.f32.vlgmr.msra.gmra.mrb[0].mxu1 %v895_v40 }
 0x26e   : > { %v994_v42 = vpop.f32.mrb[0].mxu0  ;;  %v999_v43 = vpop.f32.mrb[0].mxu1 }
 0x26f   : > { %v1004_v44 = vadd.f32 %v1003_v41, %v994_v42  ;;  %v996_v45 = vpop.f32.mrb[1].mxu0  ;;  %v1001_v46 = vpop.f32.mrb[1].mxu1  ;;  %v1005_v47 = vadd.f32 %v1003_v41, %v999_v43 }
 0x271   : > { %1008 = vadd.xlane.f32.xlu0 %v1004_v44 }
 0x275   : > { %1010 = vadd.xlane.f32.xlu0 %v1005_v47 }
 0x2fe   : > { %v1009_v48 = vpop.xlane.xlu0 %1008 }
 0x2ff   : > { %v1013_v49 = vmul.f32 0.0078125, %v1009_v48 }
 0x301   : > { %v1015_v50 = vsub.f32 %v1004_v44, %v1013_v49 }
 0x302   : > { %v1011_v51 = vpop.xlane.xlu0 %1010 }
 0x303   : > { %v1014_v52 = vmul.f32 0.0078125, %v1011_v51  ;;  %v1017_v53 = vmul.f32 %v1015_v50, %v1015_v50 }
 0x305   : > { %v1016_v54 = vsub.f32 %v1005_v47, %v1014_v52  ;;  %1019 = vadd.xlane.f32.xlu1 %v1017_v53 }
 0x307   : > { %v1018_v55 = vmul.f32 %v1016_v54, %v1016_v54 }
 0x309   : > { %1021 = vadd.xlane.f32.xlu1 %v1018_v55 }
 0x392   : > { %v1020_v56 = vpop.xlane.xlu1 %1019 }
 0x393   : > { %v1023_v57 = vmul.f32 0.0078125, %v1020_v56 }
 0x395   : > { %v1025_v58 = vadd.f32 1e-05, %v1023_v57 }
 0x396   : > { %v1022_v59 = vpop.xlane.xlu1 %1021 }
 0x397   : > { %3889 = vrsqrt.f32 %v1025_v58  ;;  %v1024_v60 = vmul.f32 0.0078125, %v1022_v59 }
 0x399   : > { %v1026_v61 = vadd.f32 1e-05, %v1024_v60 }
 0x39b   : > { %3891 = vrsqrt.f32 %v1026_v61 }
 0x3a1   : > { %v3890_v62 = vpop.eup %3889 }
 0x3a2   : > { %v1029_v0 = vmul.f32 %v3890_v62, %v1015_v50 }
 0x3a4   : > { %v1037_v2 = vmul.f32 %v3375_v63, %v1029_v0 }
 0x3a5   : > { %v3892_v3 = vpop.eup %3891 }
 0x3a6   : > { %v1045_v4 = vadd.f32 %v3376_v1, %v1037_v2  ;;  %v1030_v5 = vmul.f32 %v3892_v3, %v1016_v54 }
 0x3a8   : > { %1047 = vst [vmem:[#allocation17] sm:$0xff] %v1045_v4  ;;  %v1038_v6 = vmul.f32 %v3375_v63, %v1030_v5 }
 0x3aa   : > { %v1046_v7 = vadd.f32 %v3376_v1, %v1038_v6 }
 0x3ac   : > { %1048 = vst [vmem:[#allocation17 + $0x8] sm:$0xff] %v1046_v7 }
 0x3ad PF: > { %v3893_v10 = vld [vmem:[%s4969_s9 + $0x4] ss:$24 sps:$4 sm:$0xff]   ;;  %v3895_v11 = vld [vmem:[%s4969_s9] ss:$24 sps:$4 sm:$0xff]   ;;  %v3899_v14 = vld [vmem:[%s4969_s9 + $0x34] ss:$24 sps:$4 sm:$0xff]  }
 0x3ae   : > { %v3896_v12 = vld [vmem:[%s4969_s9 + $0xc] ss:$24 sps:$4 sm:$0xff]   ;;  %v3898_v13 = vld [vmem:[%s4969_s9 + $0x8] ss:$24 sps:$4 sm:$0xff]   ;;  %1414 = vmatprep.subr.bf16.mxu0 %v3893_v10  ;;  %v3902_v16 = vld [vmem:[%s4969_s9 + $0x3c] ss:$24 sps:$4 sm:$0xff]  }
 0x3af   : > { %v1049_v8 = vld [vmem:[#allocation17] sm:$0xff]  ;;  %v3901_v15 = vld [vmem:[%s4969_s9 + $0x30] ss:$24 sps:$4 sm:$0xff]   ;;  %1457 = vmatprep.subr.bf16.mxu1 %v3896_v12  ;;  %1415 = vmatpush1.bf16.msra.mxu0 %v3895_v11  ;;  %v3911_v30 = vld [vmem:[%s4969_s9 + $0x94] ss:$24 sps:$4 sm:$0xff]   ;;  %v4508_v44 = vmov 0  }
 0x3b0   : > { %1054 = vadd.xlane.f32.xlu0 %v1049_v8  ;;  %1458 = vmatpush1.bf16.msra.mxu1 %v3898_v13  ;;  %v3904_v25 = vld [vmem:[%s4969_s9 + $0x38] ss:$24 sps:$4 sm:$0xff]   ;;  %v3905_v26 = vld [vmem:[%s4969_s9 + $0x64] ss:$24 sps:$4 sm:$0xff]   ;;  %v3910_v29 = vld [vmem:[%s4969_s9 + $0x68] ss:$24 sps:$4 sm:$0xff]  }
 0x3b1   : > { %1416 = vmatprep.subr.bf16.mxu0 %v3899_v14  ;;  %1459 = vmatprep.subr.bf16.mxu1 %v3902_v16  ;;  %v3907_v27 = vld [vmem:[%s4969_s9 + $0x60] ss:$24 sps:$4 sm:$0xff]   ;;  %v3908_v28 = vld [vmem:[%s4969_s9 + $0x6c] ss:$24 sps:$4 sm:$0xff]   ;;  %v3913_v31 = vld [vmem:[%s4969_s9 + $0x90] ss:$24 sps:$4 sm:$0xff]  }
 0x3b2   : > { %v3914_v32 = vld [vmem:[%s4969_s9 + $0x9c] ss:$24 sps:$4 sm:$0xff]   ;;  %v3916_v33 = vld [vmem:[%s4969_s9 + $0x98] ss:$24 sps:$4 sm:$0xff]   ;;  %v3920_v36 = vld [vmem:[%s4969_s9 + $0xcc] ss:$24 sps:$4 sm:$0xff]   ;;  %1446 = vmatprep.mubr.bf16.mxu0 %v4508_v44  ;;  %1489 = vmatprep.mubr.bf16.mxu1 %v4508_v44 }
 0x3b3   : > { %v1050_v9 = vld [vmem:[#allocation17 + $0x8] sm:$0xff]  ;;  %1417 = vmatpush1.bf16.msra.mxu0 %v3901_v15  ;;  %v3917_v34 = vld [vmem:[%s4969_s9 + $0xc4] ss:$24 sps:$4 sm:$0xff]   ;;  %v3919_v35 = vld [vmem:[%s4969_s9 + $0xc0] ss:$24 sps:$4 sm:$0xff]   ;;  %s5637_s2 = sld [smem:[#allocation34_spill]] }
 0x3b4   : > { %1056 = vadd.xlane.f32.xlu0 %v1050_v9  ;;  %1460 = vmatpush1.bf16.msra.mxu1 %v3904_v25  ;;  %v3922_v37 = vld [vmem:[%s4969_s9 + $0xc8] ss:$24 sps:$4 sm:$0xff]   ;;  %v3923_v38 = vld [vmem:[%s4969_s9 + $0xf4] ss:$24 sps:$4 sm:$0xff]   ;;  %v3928_v41 = vld [vmem:[%s4969_s9 + $0xf8] ss:$24 sps:$4 sm:$0xff]  }
 0x3b5   : > { %1418 = vmatprep.subr.bf16.mxu0 %v3905_v26  ;;  %1461 = vmatprep.subr.bf16.mxu1 %v3908_v28  ;;  %v3926_v39 = vld [vmem:[%s4969_s9 + $0xfc] ss:$24 sps:$4 sm:$0xff]   ;;  %v3925_v40 = vld [vmem:[%s4969_s9 + $0xf0] ss:$24 sps:$4 sm:$0xff]   ;;  %v3932_v43 = vld [vmem:[%s4969_s9 + $0x12c] ss:$24 sps:$4 sm:$0xff]  }
 0x3b6   : > { %v3929_v42 = vld [vmem:[%s4969_s9 + $0x124] ss:$24 sps:$4 sm:$0xff]   ;;  %v3931_v45 = vld [vmem:[%s4969_s9 + $0x120] ss:$24 sps:$4 sm:$0xff]   ;;  %v3935_v47 = vld [vmem:[%s4969_s9 + $0x154] ss:$24 sps:$4 sm:$0xff]  }
 0x3b7   : > { %1419 = vmatpush1.bf16.msra.mxu0 %v3907_v27  ;;  %v3934_v46 = vld [vmem:[%s4969_s9 + $0x128] ss:$24 sps:$4 sm:$0xff]   ;;  %v3938_v48 = vld [vmem:[%s4969_s9 + $0x15c] ss:$24 sps:$4 sm:$0xff]   ;;  %v3940_v50 = vld [vmem:[%s4969_s9 + $0x158] ss:$24 sps:$4 sm:$0xff]  }
 0x3b8   : > { %1462 = vmatpush1.bf16.msra.mxu1 %v3910_v29  ;;  %1420 = vmatprep.subr.bf16.mxu0 %v3911_v30  ;;  %v3937_v49 = vld [vmem:[%s4969_s9 + $0x150] ss:$24 sps:$4 sm:$0xff]   ;;  %v3943_v51 = vld [vmem:[%s4969_s9 + $0x14] ss:$24 sps:$4 sm:$0xff]   ;;  %s5639_s13 = sld [smem:[#allocation35_spill]]  ;;  %vm4510_vm1 = vmmov 0  }
 0x3b9   : > { %1463 = vmatprep.subr.bf16.mxu1 %v3914_v32  ;;  %s5638_s12 = scalar_lea.vmem %s5637_s2, %s4977_s26  ;;  %v3941_v4 = vld [vmem:[%s4969_s9 + $0x10] ss:$24 sps:$4 sm:$0xff]   ;;  %v3946_v6 = vld [vmem:[%s4969_s9 + $0x44] ss:$24 sps:$4 sm:$0xff]   ;;  %v3944_v7 = vld [vmem:[%s4969_s9 + $0x40] ss:$24 sps:$4 sm:$0xff]  }
 0x3ba   : > { %v3377_v60 = vld [vmem:[%s5638_s12] ss:$0 sm:$0xff]  ;;  %v3952_v10 = vld [vmem:[%s4969_s9 + $0xa4] ss:$24 sps:$4 sm:$0xff]   ;;  %v3950_v11 = vld [vmem:[%s4969_s9 + $0xa0] ss:$24 sps:$4 sm:$0xff]  }
 0x3bb   : > { %1421 = vmatpush1.bf16.msra.mxu0 %v3913_v31  ;;  %v3955_v12 = vld [vmem:[%s4969_s9 + $0xd4] ss:$24 sps:$4 sm:$0xff]   ;;  %v3953_v13 = vld [vmem:[%s4969_s9 + $0xd0] ss:$24 sps:$4 sm:$0xff]   ;;  %v3958_v14 = vld [vmem:[%s4969_s9 + $0x104] ss:$24 sps:$4 sm:$0xff]  }
 0x3bc   : > { %1464 = vmatpush1.bf16.msra.mxu1 %v3916_v33  ;;  %1422 = vmatprep.subr.bf16.mxu0 %v3917_v34  ;;  %v3956_v15 = vld [vmem:[%s4969_s9 + $0x100] ss:$24 sps:$4 sm:$0xff]   ;;  %v3961_v16 = vld [vmem:[%s4969_s9 + $0x134] ss:$24 sps:$4 sm:$0xff]   ;;  %vm1695_vm2 = vcmask 1043456   ;;  %vm1667_vm3 = vcmask 64512  }
 0x3bd   : > { %1465 = vmatprep.subr.bf16.mxu1 %v3920_v36  ;;  %s4511_s0 = smov [#allocation17]   ;;  %p3834_p13 = scmp.eq.s32.totalorder %s4630_s1, 1 }
 0x3be   : > { %s5640_s3 = scalar_lea.vmem %s5639_s13, %s4977_s26 }
 0x3bf   : > { %1423 = vmatpush1.bf16.msra.mxu0 %v3919_v35  ;;  %v3378_v0 = vld [vmem:[%s5640_s3] ss:$0 sm:$0xff] }
 0x3c0   : > { %1466 = vmatpush1.bf16.msra.mxu1 %v3922_v37  ;;  %1424 = vmatprep.subr.bf16.mxu0 %v3923_v38 }
 0x3c1   : > { %1467 = vmatprep.subr.bf16.mxu1 %v3926_v39 }
 0x3c3   : > { %1425 = vmatpush1.bf16.msra.mxu0 %v3925_v40 }
 0x3c4   : > { %1468 = vmatpush1.bf16.msra.mxu1 %v3928_v41  ;;  %1426 = vmatprep.subr.bf16.mxu0 %v3929_v42 }
 0x3c5   : > { %1469 = vmatprep.subr.bf16.mxu1 %v3932_v43 }
 0x3c7   : > { %1427 = vmatpush1.bf16.msra.mxu0 %v3931_v45 }
 0x3c8   : > { %1470 = vmatpush1.bf16.msra.mxu1 %v3934_v46  ;;  %1428 = vmatprep.subr.bf16.mxu0 %v3935_v47 }
 0x3c9   : > { %1471 = vmatprep.subr.bf16.mxu1 %v3938_v48 }
 0x3cb   : > { %1429 = vmatpush1.bf16.msra.mxu0 %v3937_v49 }
 0x3cc   : > { %1472 = vmatpush1.bf16.msra.mxu1 %v3940_v50  ;;  %1500 = vmatprep.subr.bf16.mxu0 %v3943_v51 }
 0x43d   : > { %v1055_v17 = vpop.xlane.xlu0 %1054 }
 0x43e   : > { %v1059_v18 = vmul.f32 0.0078125, %v1055_v17  ;;  %v3959_v17 = vld [vmem:[%s4969_s9 + $0x130] ss:$24 sps:$4 sm:$0xff]  }
 0x440   : > { %v5054_v19 = vsub.f32 %v1049_v8, %v1059_v18  ;;  %v3949_v8 = vld [vmem:[%s4969_s9 + $0x74] ss:$24 sps:$4 sm:$0xff]   ;;  %v3964_v18 = vld [vmem:[%s4969_s9 + $0x164] ss:$24 sps:$4 sm:$0xff]  }
 0x441   : > { %v1057_v20 = vpop.xlane.xlu0 %1056 }
 0x442   : > { %v1060_v21 = vmul.f32 0.0078125, %v1057_v20  ;;  %v1063_v22 = vmul.f32 %v5054_v19, %v5054_v19  ;;  %v4509_v20 = vmov 0.0  }
 0x443   : > { %3601 = vmatprep.subr.bf16.mxu1 %v4509_v20 }
 0x444   : > { %v5058_v23 = vsub.f32 %v1050_v9, %v1060_v21  ;;  %1065 = vadd.xlane.f32.xlu1 %v1063_v22  ;;  %v3947_v9 = vld [vmem:[%s4969_s9 + $0x70] ss:$24 sps:$4 sm:$0xff]   ;;  %v1144_v21 = vlaneseq }
 0x446   : > { %v1064_v24 = vmul.f32 %v5058_v23, %v5058_v23  ;;  %v5124_v22 = vshrl.u32 %v1144_v21, 7 }
 0x448   : > { %1067 = vadd.xlane.f32.xlu1 %v1064_v24  ;;  %v1142_v24 = vld [vmem:[%s5003_s27] sm:$0x3f]  ;;  %v1158_v25 = vsub.s32 3, %v5124_v22  ;;  %v1146_v27 = vsub.s32 0, %v5124_v22  ;;  %v1150_v28 = vsub.s32 1, %v5124_v22 }
 0x44a   : > { %v1159_v29 = vrot.slane %v1142_v24, %v1158_v25  ;;  %v1147_v35 = vrot.slane %v1142_v24, %v1146_v27  ;;  %v1151_v36 = vrot.slane %v1142_v24, %v1150_v28 }
 0x4d1   : > { %v1066_v52 = vpop.xlane.xlu1 %1065 }
 0x4d2   : > { %v1069_v53 = vmul.f32 0.0078125, %v1066_v52 }
 0x4d4   : > { %v1071_v54 = vadd.f32 1e-05, %v1069_v53 }
 0x4d5   : > { %v1068_v55 = vpop.xlane.xlu1 %1067 }
 0x4d6   : > { %4061 = vrsqrt.f32 %v1071_v54  ;;  %v1070_v56 = vmul.f32 0.0078125, %v1068_v55  ;;  %v1162_v55 = vsub.s32 4, %v5124_v22 }
 0x4d8   : > { %v1072_v57 = vadd.f32 1e-05, %v1070_v56  ;;  %v1166_v56 = vsub.s32 5, %v5124_v22 }
 0x4da   : > { %4063 = vrsqrt.f32 %v1072_v57  ;;  %v1163_v57 = vrot.slane %v1142_v24, %v1162_v55 }
 0x4e0   : > { %v4062_v58 = vpop.eup %4061 }
 0x4e1   : > { %v1075_v59 = vmul.f32 %v4062_v58, %v5054_v19  ;;  %v3962_v19 = vld [vmem:[%s4969_s9 + $0x160] ss:$24 sps:$4 sm:$0xff]   ;;  %v1167_v58 = vrot.slane %v1142_v24, %v1166_v56 }
 0x4e3   : > { %v1083_v63 = vmul.f32 %v3377_v60, %v1075_v59 }
 0x4e4   : > { %v4064_v61 = vpop.eup %4063 }
 0x4e5   : > { %v1076_v62 = vmul.f32 %v4064_v61, %v5058_v23  ;;  %v1091_v2 = vadd.f32 %v3378_v0, %v1083_v63  ;;  %v1154_v23 = vsub.s32 2, %v5124_v22 }
 0x4e7   : > { %v1084_v1 = vmul.f32 %v3377_v60, %v1076_v62  ;;  %v1155_v26 = vrot.slane %v1142_v24, %v1154_v23 }
 0x4e9   : > { %v1092_v3 = vadd.f32 %v3378_v0, %v1084_v1 }
 0x4eb   : > { %v1093_v5 = vpack.c.bf16 %v1092_v3, %v1091_v2 }
 0x4ed   : > { %1447 = vmatmul.mubr.bf16.vlgmr.msra.gmra.mrb[0].mxu0 %v1093_v5  ;;  %1490 = vmatmul.mubr.bf16.vlgmr.msra.gmra.mrb[0].mxu1 %v1093_v5 }
 0x4ee   : > { %1501 = vmatpush1.bf16.msra.mxu0 %v3941_v4  ;;  %1532 = vmatprep.mubr.bf16.mxu0 %v4508_v44 }
 0x4ef   : > { %1502 = vmatprep.subr.bf16.mxu0 %v3946_v6  ;;  %3603 = vmatprep.mubr.msk.bf16.mxu1 %vm4510_vm1, %v4509_v20 }
 0x4f2   : > { %1503 = vmatpush1.bf16.msra.mxu0 %v3944_v7 }
 0x4f3   : > { %1504 = vmatprep.subr.bf16.mxu0 %v3949_v8 }
 0x4f6   : > { %1505 = vmatpush1.bf16.msra.mxu0 %v3947_v9 }
 0x4f7   : > { %1506 = vmatprep.subr.bf16.mxu0 %v3952_v10 }
 0x4fa   : > { %1507 = vmatpush1.bf16.msra.mxu0 %v3950_v11  ;;  %v5162_v11 = vld [vmem:[#allocation11] ss:$0 sm:$0xff] }
 0x4fb   : > { %1508 = vmatprep.subr.bf16.mxu0 %v3955_v12 }
 0x4fe   : > { %1509 = vmatpush1.bf16.msra.mxu0 %v3953_v13 }
 0x4ff   : > { %1510 = vmatprep.subr.bf16.mxu0 %v3958_v14 }
 0x502   : > { %1511 = vmatpush1.bf16.msra.mxu0 %v3956_v15 }
 0x503   : > { %1512 = vmatprep.subr.bf16.mxu0 %v3961_v16 }
 0x506   : > { %1513 = vmatpush1.bf16.msra.mxu0 %v3959_v17 }
 0x507   : > { %1514 = vmatprep.subr.bf16.mxu0 %v3964_v18 }
 0x50a   : > { %1515 = vmatpush1.bf16.msra.mxu0 %v3962_v19 }
 0x50b   : > { %3625 = vmatprep.subr.bf16.mxu0 %v4509_v20 }
 0x50d   : > { %1533 = vmatmul.mubr.bf16.vlgmr.msra.gmra.mrb[4].mxu0 %v1093_v5 }
 0x50e   : > { %3627 = vmatprep.mubr.msk.bf16.mxu0 %vm4510_vm1, %v4509_v20 }
 0x5c0   : > { %v1448_v30 = vpop.f32.mrb[0].mxu0  ;;  %v1491_v31 = vpop.f32.mrb[0].mxu1 }
 0x5c1   : > { %v1492_v32 = vadd.f32 %v1491_v31, %v1155_v26  ;;  %v1450_v33 = vpop.f32.mrb[1].mxu0  ;;  %v1493_v34 = vpop.f32.mrb[1].mxu1  ;;  %v1449_v47 = vadd.f32 %v1448_v30, %v1147_v35 }
 0x5c2   : > { %v1494_v37 = vadd.f32 %v1493_v34, %v1159_v29  ;;  %v1452_v38 = vpop.f32.mrb[2].mxu0  ;;  %v1495_v39 = vpop.f32.mrb[2].mxu1  ;;  %v1451_v48 = vadd.f32 %v1450_v33, %v1151_v36 }
 0x5c3   : > { %v1577_v40 = vpack.c.bf16 %v1492_v32, %v1492_v32  ;;  %v1454_v41 = vpop.f32.mrb[3].mxu0  ;;  %v1497_v42 = vpop.f32.mrb[3].mxu1  ;;  %v1496_v49 = vadd.f32 %v1495_v39, %v1155_v26  ;;  %v1575_v50 = vpack.c.bf16 %v1449_v47, %v1449_v47  ;;  %v1453_v53 = vadd.f32 %v1452_v38, %v1147_v35 }
 0x5c4   : > { %v1788_v43 = vpack.c.bf16 %v1494_v37, %v1494_v37  ;;  %v5139_v45 = vadd.f32 %v1454_v41, %v1151_v36  ;;  %v5141_v46 = vadd.f32 %v1497_v42, %v1159_v29  ;;  %v1786_v51 = vpack.c.bf16 %v1451_v48, %v1451_v48 }
 0x5c5   : > { %3602 = vmatpush3.bf16.xpose.msra.mxu1 %v1577_v40  ;;  %v1578_v52 = vpack.c.bf16 %v1496_v49, %v1496_v49  ;;  %v1576_v54 = vpack.c.bf16 %v1453_v53, %v1453_v53 }
 0x5c6   : > { %3626 = vmatpush3.bf16.xpose.msra.mxu0 %v1788_v43  ;;  %3607 = vmatprep.subr.bf16.mxu1 %v4509_v20 }
 0x5c7   : > { %3637 = vmatprep.subr.bf16.mxu0 %v4509_v20 }
 0x5cc   : > { %3604 = vmatmul.mubr.bf16.vlgmr.msra.gmra.mrb[4].mxu1 %v1575_v50 }
 0x5cd   : > { %3608 = vmatpush3.bf16.xpose.msra.mxu1 %v1578_v52  ;;  %3628 = vmatmul.mubr.bf16.vlgmr.msra.gmra.mrb[8].mxu0 %v1786_v51 }
 0x5ce   : > { %3609 = vmatprep.mubr.msk.bf16.mxu1 %vm4510_vm1, %v4509_v20  ;;  %3613 = vmatprep.subr.bf16.mxu1 %v4509_v20 }
 0x5cf   : > { %3639 = vmatprep.mubr.msk.bf16.mxu0 %vm4510_vm1, %v4509_v20 }
 0x5d4   : > { %3610 = vmatmul.mubr.bf16.vlgmr.msra.gmra.mrb[8].mxu1 %v1576_v54 }
 0x5d5   : > { %3615 = vmatprep.mubr.msk.bf16.mxu1 %vm4510_vm1, %v4509_v20 }
 0x5e0   : > { %v1534_v59 = vpop.f32.mrb[4].mxu0 }
 0x5e1   : > { %v1535_v60 = vadd.f32 %v1534_v59, %v1163_v57  ;;  %v1536_v61 = vpop.f32.mrb[5].mxu0 }
 0x5e2   : > { %v1537_v62 = vadd.f32 %v1536_v61, %v1167_v58  ;;  %v1538_v63 = vpop.f32.mrb[6].mxu0 }
 0x5e3   : > { %v1579_v0 = vpack.c.bf16 %v1535_v60, %v1535_v60  ;;  %v1539_v1 = vadd.f32 %v1538_v63, %v1163_v57  ;;  %v1540_v2 = vpop.f32.mrb[7].mxu0  ;;  %v1787_v63 = vpack.c.bf16 %v5139_v45, %v5139_v45 }
 0x5e4   : > { %v1790_v3 = vpack.c.bf16 %v1537_v62, %v1537_v62  ;;  %v1541_v4 = vadd.f32 %v1540_v2, %v1167_v58  ;;  %v1789_v62 = vpack.c.bf16 %v5141_v46, %v5141_v46 }
 0x5e5   : > { %v1697_v5 = vsel %vm1695_vm2, %v1579_v0, 0  ;;  %v1580_v6 = vpack.c.bf16 %v1539_v1, %v1539_v1 }
 0x5e6   : > { %v1900_v7 = vsel %vm1695_vm2, %v1790_v3, 0  ;;  %v1791_v8 = vpack.c.bf16 %v1541_v4, %v1541_v4  ;;  %3614 = vmatpush3.bf16.msra.mxu1 %v1697_v5 }
 0x5e7   : > { %v1743_v9 = vsel %vm1695_vm2, %v1580_v6, 0  ;;  %3638 = vmatpush3.bf16.msra.mxu0 %v1900_v7  ;;  %3619 = vmatprep.subr.bf16.mxu1 %v4509_v20 }
 0x5e8   : > { %v5159_v10 = vsel %vm1695_vm2, %v1791_v8, 0  ;;  %3649 = vmatprep.subr.bf16.mxu0 %v4509_v20 }
 0x69f   : > { %v1621_v12 = vpop.f32.mrb[4].mxu1 }
 0x6a0   : > { %v1622_v13 = vadd.f32 %v5162_v11, %v1621_v12  ;;  %v3605_v14 = vpop.f32.mrb[5].mxu1  ;;  %v1826_v15 = vpop.f32.mrb[8].mxu0 }
 0x6a1   : > { %v1624_v16 = vpop.f32.mrb[6].mxu1  ;;  %v3629_v17 = vpop.f32.mrb[9].mxu0  ;;  %v1827_v41 = vadd.f32 %v5162_v11, %v1826_v15 }
 0x6a2   : > { %v3606_v18 = vpop.f32.mrb[7].mxu1  ;;  %v1829_v19 = vpop.f32.mrb[10].mxu0  ;;  %v1668_v21 = vsel %vm1667_vm3, %v1622_v13, -inf }
 0x6a3   : > { %v3630_v24 = vpop.f32.mrb[11].mxu0  ;;  %1669 = vmax.xlane.f32.xlu0 %v1668_v21  ;;  %v1872_v43 = vsel %vm1667_vm3, %v1827_v41, -inf }
 0x6a7   : > { %v1661_v26 = vpop.f32.mrb[8].mxu1 }
 0x6a8   : > { %v1662_v29 = vadd.f32 %v5162_v11, %v1661_v26  ;;  %v3611_v30 = vpop.f32.mrb[9].mxu1 }
 0x6a9   : > { %v1664_v31 = vpop.f32.mrb[10].mxu1 }
 0x6aa   : > { %v3612_v32 = vpop.f32.mrb[11].mxu1  ;;  %v1671_v33 = vsel %vm1667_vm3, %v1662_v29, -inf }
 0x6ab   : > { %1672 = vmax.xlane.f32.xlu1 %v1671_v33  ;;  %v3973_v32 = vld [vmem:[%s5015_s29 + $0x40] sm:$0xff]   ;;  %v3974_v33 = vld [vmem:[%s5015_s29 + $0x48] sm:$0xff]  }
 0x730   : > { %v1670_v34 = vpop.xlane.xlu0 %1669 }
 0x731   : > { %v1674_v35 = vsub.f32 %v1622_v13, %v1670_v34  ;;  %v3975_v34 = vld [vmem:[%s5015_s29 + $0x50] sm:$0xff]  }
 0x733   : > { %v1676_v36 = vmul.f32 1.442695, %v1674_v35  ;;  %v3976_v35 = vld [vmem:[%s5015_s29 + $0x58] sm:$0xff]  }
 0x735   : > { %4065 = vpow2.f32 %v1676_v36  ;;  %v3977_v36 = vld [vmem:[%s5015_s29 + $0x60] sm:$0xff]  }
 0x738   : > { %v1673_v37 = vpop.xlane.xlu1 %1672 }
 0x739   : > { %v1675_v38 = vsub.f32 %v1662_v29, %v1673_v37  ;;  %v3978_v37 = vld [vmem:[%s5015_s29 + $0x68] sm:$0xff]  }
 0x73b   : > { %v1678_v39 = vmul.f32 1.442695, %v1675_v38  ;;  %v3979_v38 = vld [vmem:[%s5015_s29 + $0x70] sm:$0xff]  }
 0x73d   : > { %4067 = vpow2.f32 %v1678_v39 }
 0x73f   : > { %v4066_v40 = vpop.eup %4065 }
 0x740   : > { %v1680_v42 = vsel %vm1667_vm3, %v4066_v40, 0.0 }
 0x741   : > { %1681 = vadd.xlane.f32.xlu0 %v1680_v42  ;;  %v3965_v42 = vld [vmem:[%s5015_s29] sm:$0xff]  }
 0x745   : > { %1873 = vmax.xlane.f32.xlu0 %v1872_v43 }
 0x747   : > { %v4068_v47 = vpop.eup %4067 }
 0x748   : > { %v1683_v48 = vsel %vm1667_vm3, %v4068_v47, 0.0 }
 0x749   : > { %1684 = vadd.xlane.f32.xlu1 %v1683_v48  ;;  %v3967_v48 = vld [vmem:[%s5015_s29 + $0x10] sm:$0xff]  }
 0x7ce   : > { %v1682_v49 = vpop.xlane.xlu0 %1681 }
 0x7cf   : > { %4069 = vrcp.f32 %v1682_v49  ;;  %v3968_v49 = vld [vmem:[%s5015_s29 + $0x18] sm:$0xff]  }
 0x7d2   : > { %v1874_v50 = vpop.xlane.xlu0 %1873 }
 0x7d3   : > { %v1878_v51 = vsub.f32 %v1827_v41, %v1874_v50  ;;  %v3969_v50 = vld [vmem:[%s5015_s29 + $0x20] sm:$0xff]  }
 0x7d5   : > { %v1880_v52 = vmul.f32 1.442695, %v1878_v51  ;;  %v3970_v51 = vld [vmem:[%s5015_s29 + $0x28] sm:$0xff]  }
 0x7d6   : > { %v1685_v53 = vpop.xlane.xlu1 %1684 }
 0x7d7   : > { %4071 = vpow2.f32 %v1880_v52  ;;  %v3971_v52 = vld [vmem:[%s5015_s29 + $0x30] sm:$0xff]  }
 0x7d8   : > { %4073 = vrcp.f32 %v1685_v53  ;;  %v3972_v53 = vld [vmem:[%s5015_s29 + $0x38] sm:$0xff]  }
 0x7d9   : > { %v4070_v54 = vpop.eup %4069 }
 0x7da   : > { %v1688_v55 = vmul.f32 %v4070_v54, %v4066_v40  ;;  %v3980_v54 = vld [vmem:[%s5015_s29 + $0x78] sm:$0xff]  }
 0x7dc   : > { %v1690_v56 = vpack.c.bf16 %v1688_v55, %v1688_v55 }
 0x7de   : > { %3616 = vmatmul.mubr.msk.bf16.vlgmr.msra.gmra.mrb[12].mxu1 %vm1667_vm3, %v1690_v56 }
 0x7df   : > { %3620 = vmatpush3.bf16.msra.mxu1 %v1743_v9  ;;  %3621 = vmatprep.mubr.msk.bf16.mxu1 %vm4510_vm1, %v4509_v20 }
 0x7e0   : > { %3631 = vmatprep.subr.bf16.mxu1 %v4509_v20 }
 0x7e1   : > { %v4072_v57 = vpop.eup %4071 }
 0x7e2   : > { %v4074_v58 = vpop.eup %4073  ;;  %v1884_v59 = vsel %vm1667_vm3, %v4072_v57, 0.0 }
 0x7e3   : > { %v1689_v60 = vmul.f32 %v4074_v58, %v4068_v47  ;;  %1885 = vadd.xlane.f32.xlu0 %v1884_v59  ;;  %v3966_v47 = vld [vmem:[%s5015_s29 + $0x8] sm:$0xff]   ;;  %s3094_s29 = sshll.u32 %s4511_s0, 4  ;;  %s3095_s29 = int_to_ptr.vmem [resolvable:$true] %s3094_s29 }
 0x7e4   : > { %s4407_s26 = scalar_lea.vmem %s3095_s29, 256  ;;  %p4414_p1 = scmp.lt.s32.totalorder %s3095_s29, %s3095_s29 }
 0x7e5   : > { %v1691_v61 = vpack.c.bf16 %v1689_v60, %v1689_v60  ;;  %p4408_p12 = scmp.ne.s32.totalorder %s3095_s29, %s4407_s26  ;;  %p4415_p7 = scmp.lt.s32.totalorder %s4407_s26, %s4407_s26 }
 0x7e7   : > { %3622 = vmatmul.mubr.msk.bf16.vlgmr.msra.gmra.mrb[16].mxu1 %vm1667_vm3, %v1691_v61  ;;  %p4409_p4 = pnand %p4408_p12, %p3834_p13  ;;  %p4416_p2 = por %p4415_p7, %p4414_p1 }
 0x7e8   : > { %3632 = vmatpush3.bf16.xpose.msra.mxu1 %v1789_v62  ;;  %3633 = vmatprep.mubr.msk.bf16.mxu1 %vm4510_vm1, %v4509_v20 }
 0x7e9   : > { %3643 = vmatprep.subr.bf16.mxu1 %v4509_v20  ;;  %p4410_p8 = pneg %p4409_p4 }
 0x7eb   : > { %p4417_p11 = pnand %p4416_p2, %p4410_p8 }
 0x7ef   : > { %3634 = vmatmul.mubr.bf16.vlgmr.msra.gmra.mrb[20].mxu1 %v1787_v63 }
 0x7f0   : > { %3644 = vmatpush3.bf16.msra.mxu1 %v5159_v10  ;;  %3645 = vmatprep.mubr.msk.bf16.mxu1 %vm4510_vm1, %v4509_v20 }
 0x7f1   : > { %3669 = vmatprep.subr.bf16.mxu1 %v4509_v20 }
 0x870   : > { %v1886_v46 = vpop.xlane.xlu0 %1885 }
 0x871   : > { %4075 = vrcp.f32 %v1886_v46 }
 0x87b   : > { %v4076_v0 = vpop.eup %4075 }
 0x87c   : > { %v1892_v1 = vmul.f32 %v4076_v0, %v4072_v57 }
 0x87e   : > { %v1894_v2 = vpack.c.bf16 %v1892_v1, %v1892_v1 }
 0x880   : > { %3640 = vmatmul.mubr.msk.bf16.vlgmr.msra.gmra.mrb[12].mxu0 %vm1667_vm3, %v1894_v2  ;;  %v3448_v2 = vld [vmem:[%s874_s8] ss:$0 sm:$0xff] }
 0x881   : > { %3665 = vmatprep.mubr.msk.bf16.mxu0 %vm4510_vm1, %v4509_v20  ;;  %3650 = vmatpush3.bf16.msra.mxu0 %v3973_v32  ;;  %v3998_v32 = vld [vmem:[%s5017_s20 + $0x4c] ss:$16 sps:$4 sm:$0xff]  }
 0x882   : > { %3651 = vmatprep.subr.bf16.mxu0 %v4509_v20 }
 0x885   : > { %3652 = vmatpush3.bf16.msra.mxu0 %v3974_v33  ;;  %v3993_v33 = vld [vmem:[%s5017_s20 + $0x40] ss:$16 sps:$4 sm:$0xff]  }
 0x886   : > { %3653 = vmatprep.subr.bf16.mxu0 %v4509_v20 }
 0x889   : > { %3654 = vmatpush3.bf16.msra.mxu0 %v3975_v34  ;;  %v3996_v34 = vld [vmem:[%s5017_s20 + $0x48] ss:$16 sps:$4 sm:$0xff]  }
 0x88a   : > { %3655 = vmatprep.subr.bf16.mxu0 %v4509_v20 }
 0x88d   : > { %3656 = vmatpush3.bf16.msra.mxu0 %v3976_v35  ;;  %v4001_v35 = vld [vmem:[%s5017_s20 + $0x64] ss:$16 sps:$4 sm:$0xff]  }
 0x88e   : > { %3657 = vmatprep.subr.bf16.mxu0 %v4509_v20 }
 0x891   : > { %3658 = vmatpush3.bf16.msra.mxu0 %v3977_v36  ;;  %v4004_v36 = vld [vmem:[%s5017_s20 + $0x6c] ss:$16 sps:$4 sm:$0xff]  }
 0x892   : > { %3659 = vmatprep.subr.bf16.mxu0 %v4509_v20 }
 0x895   : > { %3660 = vmatpush3.bf16.msra.mxu0 %v3978_v37  ;;  %v3999_v37 = vld [vmem:[%s5017_s20 + $0x60] ss:$16 sps:$4 sm:$0xff]  }
 0x896   : > { %3661 = vmatprep.subr.bf16.mxu0 %v4509_v20 }
 0x899   : > { %3662 = vmatpush3.bf16.msra.mxu0 %v3979_v38  ;;  %v4002_v38 = vld [vmem:[%s5017_s20 + $0x68] ss:$16 sps:$4 sm:$0xff]  }
 0x89a   : > { %3663 = vmatprep.subr.bf16.mxu0 %v4509_v20 }
 0x89d   : > { %3664 = vmatpush3.bf16.msra.mxu0 %v3980_v54  ;;  %v4025_v54 = vld [vmem:[%s5017_s20 + $0xe4] ss:$16 sps:$4 sm:$0xff]  }
 0x8b1   : > { %v5192_v3 = vpop.f32.mrb[12].mxu1 }
 0x8b2   : > { %v3617_v45 = vpop.f32.mrb[13].mxu1 }
 0x8b3   : > { %v1736_v4 = vpop.f32.mrb[14].mxu1 }
 0x8b4   : > { %v3618_v5 = vpop.f32.mrb[15].mxu1 }
 0x8b5   : > { %v4118_v5 = vld [vmem:[#allocation17 + $0x8] sm:$0xff] }
 0x8ba   : > { %v5194_v6 = vpop.f32.mrb[16].mxu1 }
 0x8bb   : > { %v1785_v7 = vpack.c.bf16 %v5194_v6, %v5192_v3  ;;  %v3623_v8 = vpop.f32.mrb[17].mxu1  ;;  %v4117_v3 = vld [vmem:[#allocation17] sm:$0xff] }
 0x8bc   : > { %v1782_v9 = vpop.f32.mrb[18].mxu1 }
 0x8bd   : > { %v3624_v10 = vpop.f32.mrb[19].mxu1  ;;  %v3981_v9 = vld [vmem:[%s5017_s20] ss:$16 sps:$4 sm:$0xff]  }
 0x8be   : > { %v3983_v10 = vld [vmem:[%s5017_s20 + $0x4] ss:$16 sps:$4 sm:$0xff]  }
 0x8bf   : > { %2433 = vmatprep.subr.bf16.mxu0 %v3983_v10  ;;  %v4030_v10 = vld [vmem:[%s5019_s17 + $0xc0] sm:$0xff]  }
 0x8c2   : > { %v1866_v12 = vpop.f32.mrb[20].mxu1 }
 0x8c3   : > { %v1867_v13 = vadd.f32 %v5162_v11, %v1866_v12  ;;  %v3635_v14 = vpop.f32.mrb[21].mxu1  ;;  %v3984_v12 = vld [vmem:[%s5017_s20 + $0x8] ss:$16 sps:$4 sm:$0xff]  }
 0x8c4   : > { %v1869_v15 = vpop.f32.mrb[22].mxu1  ;;  %v3989_v14 = vld [vmem:[%s5017_s20 + $0x24] ss:$16 sps:$4 sm:$0xff]  }
 0x8c5   : > { %v3636_v16 = vpop.f32.mrb[23].mxu1  ;;  %v1875_v17 = vsel %vm1667_vm3, %v1867_v13, -inf  ;;  %v3992_v15 = vld [vmem:[%s5017_s20 + $0x2c] ss:$16 sps:$4 sm:$0xff]  }
 0x8c6   : > { %1876 = vmax.xlane.f32.xlu1 %v1875_v17  ;;  %v3987_v16 = vld [vmem:[%s5017_s20 + $0x20] ss:$16 sps:$4 sm:$0xff]   ;;  %v3990_v17 = vld [vmem:[%s5017_s20 + $0x28] ss:$16 sps:$4 sm:$0xff]  }
 0x953   : > { %v1877_v18 = vpop.xlane.xlu1 %1876  ;;  %v5200_v19 = vpop.f32.mrb[12].mxu0 }
 0x954   : > { %v1879_v21 = vsub.f32 %v1867_v13, %v1877_v18  ;;  %v3641_v24 = vpop.f32.mrb[13].mxu0  ;;  %v3986_v13 = vld [vmem:[%s5017_s20 + $0xc] ss:$16 sps:$4 sm:$0xff]  }
 0x955   : > { %v1939_v26 = vpop.f32.mrb[14].mxu0 }
 0x956   : > { %v1882_v29 = vmul.f32 1.442695, %v1879_v21  ;;  %v3642_v30 = vpop.f32.mrb[15].mxu0 }
 0x958   : > { %4077 = vpow2.f32 %v1882_v29 }
 0x962   : > { %v4078_v11 = vpop.eup %4077 }
 0x963   : > { %v1887_v31 = vsel %vm1667_vm3, %v4078_v11, 0.0 }
 0x964   : > { %1888 = vadd.xlane.f32.xlu1 %v1887_v31  ;;  %v3995_v31 = vld [vmem:[%s5017_s20 + $0x44] ss:$16 sps:$4 sm:$0xff]  }
 0x9f1   : > { %v1889_v39 = vpop.xlane.xlu1 %1888 }
 0x9f2   : > { %4079 = vrcp.f32 %v1889_v39  ;;  %v4007_v39 = vld [vmem:[%s5017_s20 + $0x84] ss:$16 sps:$4 sm:$0xff]  }
 0x9fc   : > { %v4080_v40 = vpop.eup %4079 }
 0x9fd   : > { %v1893_v41 = vmul.f32 %v4080_v40, %v4078_v11  ;;  %v4010_v40 = vld [vmem:[%s5017_s20 + $0x8c] ss:$16 sps:$4 sm:$0xff]  }
 0x9ff   : > { %v1895_v43 = vpack.c.bf16 %v1893_v41, %v1893_v41  ;;  %v4005_v41 = vld [vmem:[%s5017_s20 + $0x80] ss:$16 sps:$4 sm:$0xff]  }
 0xa01   : > { %3646 = vmatmul.mubr.msk.bf16.vlgmr.msra.gmra.mrb[24].mxu1 %vm1667_vm3, %v1895_v43  ;;  %v4013_v43 = vld [vmem:[%s5017_s20 + $0xa4] ss:$16 sps:$4 sm:$0xff]  }
 0xa02   : > { %3670 = vmatpush3.bf16.msra.mxu1 %v3965_v42  ;;  %3685 = vmatprep.mubr.msk.bf16.mxu1 %vm4510_vm1, %v4509_v20  ;;  %v4008_v42 = vld [vmem:[%s5017_s20 + $0x88] ss:$16 sps:$4 sm:$0xff]  }
 0xa03   : > { %3671 = vmatprep.subr.bf16.mxu1 %v4509_v20 }
 0xa06   : > { %3672 = vmatpush3.bf16.msra.mxu1 %v3966_v47  ;;  %v4016_v47 = vld [vmem:[%s5017_s20 + $0xac] ss:$16 sps:$4 sm:$0xff]  }
 0xa07   : > { %3673 = vmatprep.subr.bf16.mxu1 %v4509_v20 }
 0xa0a   : > { %3674 = vmatpush3.bf16.msra.mxu1 %v3967_v48  ;;  %v4011_v48 = vld [vmem:[%s5017_s20 + $0xa0] ss:$16 sps:$4 sm:$0xff]  }
 0xa0b   : > { %3675 = vmatprep.subr.bf16.mxu1 %v4509_v20 }
 0xa0e   : > { %3676 = vmatpush3.bf16.msra.mxu1 %v3968_v49  ;;  %v4014_v49 = vld [vmem:[%s5017_s20 + $0xa8] ss:$16 sps:$4 sm:$0xff]  }
 0xa0f   : > { %3677 = vmatprep.subr.bf16.mxu1 %v4509_v20 }
 0xa12   : > { %3678 = vmatpush3.bf16.msra.mxu1 %v3969_v50  ;;  %v4019_v50 = vld [vmem:[%s5017_s20 + $0xc4] ss:$16 sps:$4 sm:$0xff]  }
 0xa13   : > { %3679 = vmatprep.subr.bf16.mxu1 %v4509_v20 }
 0xa16   : > { %3680 = vmatpush3.bf16.msra.mxu1 %v3970_v51  ;;  %v4022_v51 = vld [vmem:[%s5017_s20 + $0xcc] ss:$16 sps:$4 sm:$0xff]  }
 0xa17   : > { %3681 = vmatprep.subr.bf16.mxu1 %v4509_v20 }
 0xa1a   : > { %3682 = vmatpush3.bf16.msra.mxu1 %v3971_v52  ;;  %v4017_v52 = vld [vmem:[%s5017_s20 + $0xc0] ss:$16 sps:$4 sm:$0xff]  }
 0xa1b   : > { %3683 = vmatprep.subr.bf16.mxu1 %v4509_v20 }
 0xa1e   : > { %3684 = vmatpush3.bf16.msra.mxu1 %v3972_v53  ;;  %v4020_v53 = vld [vmem:[%s5017_s20 + $0xc8] ss:$16 sps:$4 sm:$0xff]  }
 0xa1f   : > { %2476 = vmatprep.subr.bf16.mxu1 %v3986_v13  ;;  %v4032_v13 = vld [vmem:[%s5019_s17 + $0x80] sm:$0xff]  }
 0xa21   : > { %3686 = vmatmul.mubr.bf16.vlgmr.msra.gmra.mrb[28].mxu1 %v1785_v7 }
 0xa22   : > { %2508 = vmatprep.mubr.bf16.mxu1 %v4508_v44  ;;  %2477 = vmatpush1.bf16.msra.mxu1 %v3984_v12  ;;  %v4031_v12 = vld [vmem:[%s5019_s17] sm:$0xff]  }
 0xa23   : > { %2478 = vmatprep.subr.bf16.mxu1 %v3992_v15  ;;  %v4034_v15 = vld [vmem:[%s5019_s17 + $0xc8] sm:$0xff]  }
 0xa26   : > { %2479 = vmatpush1.bf16.msra.mxu1 %v3990_v17  ;;  %v4036_v17 = vld [vmem:[%s5019_s17 + $0x88] sm:$0xff]  }
 0xa27   : > { %2480 = vmatprep.subr.bf16.mxu1 %v3998_v32  ;;  %v4046_v32 = vld [vmem:[%s5019_s17 + $0xe0] sm:$0xff]  }
 0xa2a   : > { %2481 = vmatpush1.bf16.msra.mxu1 %v3996_v34  ;;  %v4048_v34 = vld [vmem:[%s5019_s17 + $0xa0] sm:$0xff]  }
 0xa2b   : > { %2482 = vmatprep.subr.bf16.mxu1 %v4004_v36  ;;  %v4050_v36 = vld [vmem:[%s5019_s17 + $0xe8] sm:$0xff]  }
 0xa2e   : > { %2483 = vmatpush1.bf16.msra.mxu1 %v4002_v38  ;;  %v4052_v38 = vld [vmem:[%s5019_s17 + $0xa8] sm:$0xff]  }
 0xa2f   : > { %2484 = vmatprep.subr.bf16.mxu1 %v4010_v40  ;;  %v4054_v40 = vld [vmem:[%s5019_s17 + $0xf0] sm:$0xff]  }
 0xa32   : > { %2485 = vmatpush1.bf16.msra.mxu1 %v4008_v42  ;;  %v4056_v42 = vld [vmem:[%s5019_s17 + $0xb0] sm:$0xff]  }
 0xa33   : > { %2486 = vmatprep.subr.bf16.mxu1 %v4016_v47  ;;  %v4058_v47 = vld [vmem:[%s5019_s17 + $0xf8] sm:$0xff]  }
 0xa36   : > { %2487 = vmatpush1.bf16.msra.mxu1 %v4014_v49  ;;  %v4060_v49 = vld [vmem:[%s5019_s17 + $0xb8] sm:$0xff]  }
 0xa37   : > { %2488 = vmatprep.subr.bf16.mxu1 %v4022_v51 }
 0xa3a   : > { %2489 = vmatpush1.bf16.msra.mxu1 %v4020_v53 }
 0xad4   : > { %v1982_v55 = vpop.f32.mrb[24].mxu1 }
 0xad5   : > { %v1988_v56 = vpack.c.bf16 %v1982_v55, %v5200_v19  ;;  %v3647_v57 = vpop.f32.mrb[25].mxu1  ;;  %v4028_v55 = vld [vmem:[%s5017_s20 + $0xec] ss:$16 sps:$4 sm:$0xff]  }
 0xad6   : > { %v1985_v58 = vpop.f32.mrb[26].mxu1  ;;  %v4026_v57 = vld [vmem:[%s5017_s20 + $0xe8] ss:$16 sps:$4 sm:$0xff]   ;;  %2490 = vmatprep.subr.bf16.mxu1 %v4028_v55 }
 0xad7   : > { %v3648_v59 = vpop.f32.mrb[27].mxu1  ;;  %3666 = vmatmul.mubr.bf16.vlgmr.msra.gmra.mrb[16].mxu0 %v1988_v56  ;;  %v4023_v56 = vld [vmem:[%s5017_s20 + $0xe0] ss:$16 sps:$4 sm:$0xff]   ;;  %2491 = vmatpush1.bf16.msra.mxu1 %v4026_v57 }
 0xad8   : > { %2465 = vmatprep.mubr.bf16.mxu0 %v4508_v44  ;;  %2434 = vmatpush1.bf16.msra.mxu0 %v3981_v9  ;;  %v4029_v9 = vld [vmem:[%s5019_s17 + $0x40] sm:$0xff]  }
 0xad9   : > { %2435 = vmatprep.subr.bf16.mxu0 %v3989_v14  ;;  %3579 = vmatprep.subr.bf16.mxu1 %v4030_v10  ;;  %v4033_v14 = vld [vmem:[%s5019_s17 + $0x48] sm:$0xff]  }
 0xadc   : > { %2436 = vmatpush1.bf16.msra.mxu0 %v3987_v16  ;;  %v4035_v16 = vld [vmem:[%s5019_s17 + $0x8] sm:$0xff]  }
 0xadd   : > { %2437 = vmatprep.subr.bf16.mxu0 %v3995_v31  ;;  %v4045_v31 = vld [vmem:[%s5019_s17 + $0x60] sm:$0xff]  }
 0xae0   : > { %2438 = vmatpush1.bf16.msra.mxu0 %v3993_v33  ;;  %v4047_v33 = vld [vmem:[%s5019_s17 + $0x20] sm:$0xff]  }
 0xae1   : > { %2439 = vmatprep.subr.bf16.mxu0 %v4001_v35  ;;  %v4049_v35 = vld [vmem:[%s5019_s17 + $0x68] sm:$0xff]  }
 0xae4   : > { %2440 = vmatpush1.bf16.msra.mxu0 %v3999_v37  ;;  %v4051_v37 = vld [vmem:[%s5019_s17 + $0x28] sm:$0xff]  }
 0xae5   : > { %2441 = vmatprep.subr.bf16.mxu0 %v4007_v39  ;;  %v4053_v39 = vld [vmem:[%s5019_s17 + $0x70] sm:$0xff]  }
 0xae8   : > { %2442 = vmatpush1.bf16.msra.mxu0 %v4005_v41  ;;  %v4055_v41 = vld [vmem:[%s5019_s17 + $0x30] sm:$0xff]  }
 0xae9   : > { %2443 = vmatprep.subr.bf16.mxu0 %v4013_v43  ;;  %v4057_v43 = vld [vmem:[%s5019_s17 + $0x78] sm:$0xff]  }
 0xaec   : > { %2444 = vmatpush1.bf16.msra.mxu0 %v4011_v48  ;;  %v4059_v48 = vld [vmem:[%s5019_s17 + $0x38] sm:$0xff]  }
 0xaed   : > { %2445 = vmatprep.subr.bf16.mxu0 %v4019_v50  ;;  %v2251_v50 = vld [vmem:[%s5009_s14] sm:$0xf] }
 0xaee   : > { %v2256_v51 = vrot.slane %v2251_v50, %v1146_v27  ;;  %v2260_v53 = vrot.slane %v2251_v50, %v1150_v28 }
 0xaf0   : > { %2446 = vmatpush1.bf16.msra.mxu0 %v4017_v52  ;;  %v2264_v52 = vrot.slane %v2251_v50, %v1154_v23 }
 0xaf1   : > { %2447 = vmatprep.subr.bf16.mxu0 %v4025_v54  ;;  %v2268_v54 = vrot.slane %v2251_v50, %v1158_v25 }
 0xaf4   : > { %v2160_v20 = vpop.f32.mrb[28].mxu1  ;;  %2448 = vmatpush1.bf16.msra.mxu0 %v4023_v56 }
 0xaf5   : > { %v3687_v60 = vpop.f32.mrb[29].mxu1  ;;  %3557 = vmatprep.subr.bf16.mxu0 %v4029_v9 }
 0xaf6   : > { %v2163_v61 = vpop.f32.mrb[30].mxu1 }
 0xaf7   : > { %v3688_v62 = vpop.f32.mrb[31].mxu1 }
 0xbaa   : > { %v2071_v63 = vpop.f32.mrb[16].mxu0 }
 0xbab   : > { %v2161_v46 = vadd.f32 %v2160_v20, %v2071_v63  ;;  %v3667_v0 = vpop.f32.mrb[17].mxu0 }
 0xbac   : > { %v2074_v1 = vpop.f32.mrb[18].mxu0 }
 0xbad   : > { %v2167_v44 = vadd.f32 %v4117_v3, %v2161_v46  ;;  %v2164_v45 = vadd.f32 %v2163_v61, %v2074_v1  ;;  %v3668_v4 = vpop.f32.mrb[19].mxu0  ;;  %v3449_v46 = vld [vmem:[%s877_s24] ss:$0 sm:$0xff] }
 0xbaf   : > { %v2168_v6 = vadd.f32 %v4118_v5, %v2164_v45  ;;  %v5247_v7 = vadd.f32 %v3448_v2, %v2167_v44  ;;  %v3450_v44 = vld [vmem:[%s880_s6] ss:$0 sm:$0xff] }
 0xbb1   : > { %2180 = vadd.xlane.f32.xlu0 %v5247_v7  ;;  %v5250_v8 = vadd.f32 %v3448_v2, %v2168_v6 }
 0xbb3   : > { %2182 = vadd.xlane.f32.xlu1 %v5250_v8 }
 0xc3e   : > { %v2181_v18 = vpop.xlane.xlu0 %2180 }
 0xc3f   : > { %v2184_v19 = vmul.f32 0.0078125, %v2181_v18  ;;  %v4037_v18 = vld [vmem:[%s5019_s17 + $0x50] sm:$0xff]  }
 0xc40   : > { %v2183_v21 = vpop.xlane.xlu1 %2182 }
 0xc41   : > { %v5262_v24 = vsub.f32 %v5247_v7, %v2184_v19  ;;  %v2185_v26 = vmul.f32 0.0078125, %v2183_v21  ;;  %v4038_v19 = vld [vmem:[%s5019_s17 + $0xd0] sm:$0xff]  }
 0xc42   : > { %v4039_v21 = vld [vmem:[%s5019_s17 + $0x10] sm:$0xff]  }
 0xc43   : > { %v5265_v29 = vsub.f32 %v5250_v8, %v2185_v26  ;;  %v2188_v30 = vmul.f32 %v5262_v24, %v5262_v24  ;;  %v4041_v26 = vld [vmem:[%s5019_s17 + $0x58] sm:$0xff]  }
 0xc45   : > { %2190 = vadd.xlane.f32.xlu0 %v2188_v30  ;;  %v2189_v11 = vmul.f32 %v5265_v29, %v5265_v29  ;;  %v4043_v30 = vld [vmem:[%s5019_s17 + $0x18] sm:$0xff]  }
 0xc47   : > { %2192 = vadd.xlane.f32.xlu1 %v2189_v11  ;;  %v4044_v11 = vld [vmem:[%s5019_s17 + $0x98] sm:$0xff]  }
 0xcd2   : > { %v2191_v58 = vpop.xlane.xlu0 %2190 }
 0xcd3   : > { %v2194_v59 = vmul.f32 0.0078125, %v2191_v58 }
 0xcd4   : > { %v2193_v20 = vpop.xlane.xlu1 %2192 }
 0xcd5   : > { %v2196_v60 = vadd.f32 1e-05, %v2194_v59  ;;  %v2195_v61 = vmul.f32 0.0078125, %v2193_v20 }
 0xcd7   : > { %4081 = vrsqrt.f32 %v2196_v60  ;;  %v2197_v62 = vadd.f32 1e-05, %v2195_v61 }
 0xcd9   : > { %4083 = vrsqrt.f32 %v2197_v62 }
 0xce1   : > { %v4082_v63 = vpop.eup %4081 }
 0xce2   : > { %v2200_v0 = vmul.f32 %v4082_v63, %v5262_v24  ;;  %v4040_v24 = vld [vmem:[%s5019_s17 + $0x90] sm:$0xff]  }
 0xce3   : > { %v4084_v1 = vpop.eup %4083 }
 0xce4   : > { %v2201_v2 = vmul.f32 %v4084_v1, %v5265_v29  ;;  %v2208_v3 = vmul.f32 %v3449_v46, %v2200_v0  ;;  %v4042_v29 = vld [vmem:[%s5019_s17 + $0xd8] sm:$0xff]  }
 0xce6   : > { %v2209_v45 = vmul.f32 %v3449_v46, %v2201_v2  ;;  %v2216_v4 = vadd.f32 %v3450_v44, %v2208_v3 }
 0xce8   : > { %v2217_v5 = vadd.f32 %v3450_v44, %v2209_v45 }
 0xcea   : > { %v2218_v6 = vpack.c.bf16 %v2217_v5, %v2216_v4 }
 0xcec   : > { %2466 = vmatmul.mubr.bf16.vlgmr.msra.gmra.mrb[20].mxu0 %v2218_v6  ;;  %2509 = vmatmul.mubr.bf16.vlgmr.msra.gmra.mrb[32].mxu1 %v2218_v6 }
 0xced   : > { %3558 = vmatpush3.bf16.msra.mxu0 %v4031_v12  ;;  %3580 = vmatpush3.bf16.msra.mxu1 %v4032_v13 }
 0xcee   : > { %3559 = vmatprep.subr.bf16.mxu0 %v4033_v14  ;;  %3581 = vmatprep.subr.bf16.mxu1 %v4034_v15 }
 0xcf1   : > { %3560 = vmatpush3.bf16.msra.mxu0 %v4035_v16  ;;  %3582 = vmatpush3.bf16.msra.mxu1 %v4036_v17 }
 0xcf2   : > { %3561 = vmatprep.subr.bf16.mxu0 %v4037_v18  ;;  %3583 = vmatprep.subr.bf16.mxu1 %v4038_v19 }
 0xcf5   : > { %3562 = vmatpush3.bf16.msra.mxu0 %v4039_v21  ;;  %3584 = vmatpush3.bf16.msra.mxu1 %v4040_v24 }
 0xcf6   : > { %3563 = vmatprep.subr.bf16.mxu0 %v4041_v26  ;;  %3585 = vmatprep.subr.bf16.mxu1 %v4042_v29 }
 0xcf9   : > { %3564 = vmatpush3.bf16.msra.mxu0 %v4043_v30  ;;  %3586 = vmatpush3.bf16.msra.mxu1 %v4044_v11 }
 0xcfa   : > { %3565 = vmatprep.subr.bf16.mxu0 %v4045_v31  ;;  %3587 = vmatprep.subr.bf16.mxu1 %v4046_v32 }
 0xcfd   : > { %3566 = vmatpush3.bf16.msra.mxu0 %v4047_v33  ;;  %3588 = vmatpush3.bf16.msra.mxu1 %v4048_v34 }
 0xcfe   : > { %3567 = vmatprep.subr.bf16.mxu0 %v4049_v35  ;;  %3589 = vmatprep.subr.bf16.mxu1 %v4050_v36 }
 0xd01   : > { %3568 = vmatpush3.bf16.msra.mxu0 %v4051_v37  ;;  %3590 = vmatpush3.bf16.msra.mxu1 %v4052_v38 }
 0xd02   : > { %3569 = vmatprep.subr.bf16.mxu0 %v4053_v39  ;;  %3591 = vmatprep.subr.bf16.mxu1 %v4054_v40 }
 0xd05   : > { %3570 = vmatpush3.bf16.msra.mxu0 %v4055_v41  ;;  %3592 = vmatpush3.bf16.msra.mxu1 %v4056_v42 }
 0xd06   : > { %3571 = vmatprep.subr.bf16.mxu0 %v4057_v43  ;;  %3593 = vmatprep.subr.bf16.mxu1 %v4058_v47 }
 0xd09   : > { %3572 = vmatpush3.bf16.msra.mxu0 %v4059_v48  ;;  %3594 = vmatpush3.bf16.msra.mxu1 %v4060_v49 }
 0xdbf   : > { %v2467_v55 = vpop.f32.mrb[20].mxu0  ;;  %v2510_v56 = vpop.f32.mrb[32].mxu1 }
 0xdc0   : > { %v5348_v57 = vadd.f32 %v2467_v55, %v2256_v51  ;;  %v5350_v58 = vadd.f32 %v2510_v56, %v2264_v52  ;;  %v2469_v59 = vpop.f32.mrb[21].mxu0  ;;  %v2512_v20 = vpop.f32.mrb[33].mxu1 }
 0xdc1   : > { %v5352_v60 = vadd.f32 %v2469_v59, %v2260_v53  ;;  %v5354_v27 = vadd.f32 %v2512_v20, %v2268_v54  ;;  %v2471_v61 = vpop.f32.mrb[22].mxu0  ;;  %v2514_v23 = vpop.f32.mrb[34].mxu1 }
 0xdc2   : > { %v5357_v62 = vmul.f32 0.70710677, %v5348_v57  ;;  %v5360_v22 = vmul.f32 0.70710677, %v5350_v58  ;;  %v2473_v6 = vpop.f32.mrb[23].mxu0  ;;  %v2516_v9 = vpop.f32.mrb[35].mxu1  ;;  %v5372_v12 = vadd.f32 %v2471_v61, %v2256_v51  ;;  %v5374_v13 = vadd.f32 %v2514_v23, %v2264_v52 }
 0xdc3   : > { %v5363_v25 = vmul.f32 0.70710677, %v5352_v60  ;;  %v5366_v28 = vmul.f32 0.70710677, %v5354_v27  ;;  %v5379_v16 = vadd.f32 %v2473_v6, %v2260_v53  ;;  %v5389_v29 = vadd.f32 %v2516_v9, %v2268_v54 }
 0xdc4   : > { %v2527_v63 = vand.u32 2147483647, %v5357_v62  ;;  %v2529_v46 = vand.u32 2147483647, %v5360_v22  ;;  %v5377_v15 = vmul.f32 0.70710677, %v5372_v12 }
 0xdc5   : > { %v2528_v0 = vand.u32 2147483647, %v5363_v25  ;;  %v2530_v1 = vand.u32 2147483647, %v5366_v28  ;;  %v5382_v17 = vmul.f32 0.70710677, %v5374_v13 }
 0xdc6   : > { %v2535_v2 = vmul.f32 0.3275911, %v2527_v63  ;;  %v2537_v3 = vmul.f32 0.3275911, %v2529_v46  ;;  %v2639_v18 = vsub.f32 0.0, %v2527_v63  ;;  %v2641_v24 = vsub.f32 0.0, %v2529_v46 }
 0xdc7   : > { %v2536_v44 = vmul.f32 0.3275911, %v2528_v0  ;;  %v2538_v5 = vmul.f32 0.3275911, %v2530_v1  ;;  %v2531_v19 = vand.u32 2147483647, %v5377_v15 }
 0xdc8   : > { %v2543_v45 = vadd.f32 1.0, %v2535_v2  ;;  %v2545_v4 = vadd.f32 1.0, %v2537_v3  ;;  %v5386_v21 = vmul.f32 0.70710677, %v5379_v16  ;;  %v2533_v26 = vand.u32 2147483647, %v5382_v17 }
 0xdc9   : > { %v2544_v10 = vadd.f32 1.0, %v2536_v44  ;;  %v2546_v14 = vadd.f32 1.0, %v2538_v5  ;;  %v2640_v30 = vsub.f32 0.0, %v2528_v0  ;;  %v2539_v11 = vmul.f32 0.3275911, %v2531_v19 }
 0xdca   : > { %4085 = vrcp.f32 %v2543_v45  ;;  %v2532_v31 = vand.u32 2147483647, %v5386_v21  ;;  %v2642_v32 = vsub.f32 0.0, %v2530_v1  ;;  %v2541_v33 = vmul.f32 0.3275911, %v2533_v26 }
 0xdcb   : > { %4087 = vrcp.f32 %v2545_v4  ;;  %v2647_v34 = vmul.f32 %v2639_v18, %v2527_v63  ;;  %v2547_v35 = vadd.f32 1.0, %v2539_v11  ;;  %v2649_v37 = vmul.f32 %v2641_v24, %v2529_v46 }
 0xdcc   : > { %4089 = vrcp.f32 %v2544_v10  ;;  %v2540_v36 = vmul.f32 0.3275911, %v2532_v31  ;;  %v2549_v38 = vadd.f32 1.0, %v2541_v33  ;;  %v5393_v39 = vmul.f32 0.70710677, %v5389_v29 }
 0xdcd   : > { %4091 = vrcp.f32 %v2546_v14  ;;  %v2648_v41 = vmul.f32 %v2640_v30, %v2528_v0  ;;  %v2643_v42 = vsub.f32 0.0, %v2531_v19  ;;  %v2650_v49 = vmul.f32 %v2642_v32, %v2530_v1 }
 0xdce   : > { %4093 = vrcp.f32 %v2547_v35  ;;  %v2548_v43 = vadd.f32 1.0, %v2540_v36  ;;  %v5401_v50 = vand.u32 2147483647, %v5393_v39  ;;  %v2655_v51 = vmul.f32 1.442695, %v2647_v34 }
 0xdcf   : > { %4095 = vrcp.f32 %v2549_v38  ;;  %v2645_v53 = vsub.f32 0.0, %v2533_v26  ;;  %v2659_v55 = vmul.f32 1.442695, %v2649_v37  ;;  %v2657_v61 = vmul.f32 1.442695, %v2648_v41 }
 0xdd0   : > { %v2542_v56 = vmul.f32 0.3275911, %v5401_v50  ;;  %v2651_v23 = vmul.f32 %v2643_v42, %v2531_v19  ;;  %4097 = vrcp.f32 %v2548_v43  ;;  %v2661_v0 = vmul.f32 1.442695, %v2650_v49 }
 0xdd1   : > { %4099 = vpow2.f32 %v2655_v51  ;;  %v2653_v44 = vmul.f32 %v2645_v53, %v2533_v26  ;;  %v2644_v45 = vsub.f32 0.0, %v2532_v31  ;;  %v2646_v41 = vsub.f32 0.0, %v5401_v50 }
 0xdd2   : > { %v2550_v1 = vadd.f32 1.0, %v2542_v56  ;;  %v2663_v10 = vmul.f32 1.442695, %v2651_v23  ;;  %vm2687_vm4 = vcmp.ge.f32.partialorder %v5357_v62, 0.0  ;;  %vm2689_vm5 = vcmp.ge.f32.partialorder %v5360_v22, 0.0 }
 0xdd3   : > { %v2667_v26 = vmul.f32 1.442695, %v2653_v44  ;;  %v2652_v11 = vmul.f32 %v2644_v45, %v2532_v31  ;;  %vm2688_vm6 = vcmp.ge.f32.partialorder %v5363_v25, 0.0  ;;  %vm2691_vm7 = vcmp.ge.f32.partialorder %v5377_v15, 0.0 }
 0xdd4   : > { %v5395_v40 = vpop.eup %4085  ;;  %4101 = vrcp.f32 %v2550_v1  ;;  %vm2693_vm8 = vcmp.ge.f32.partialorder %v5382_v17, 0.0  ;;  %vm2692_vm9 = vcmp.ge.f32.partialorder %v5386_v21, 0.0  ;;  %vm2690_vm10 = vcmp.ge.f32.partialorder %v5366_v28, 0.0 }
 0xdd5   : > { %v5397_v47 = vpop.eup %4087  ;;  %v2567_v48 = vmul.f32 1.0614054, %v5395_v40  ;;  %4103 = vpow2.f32 %v2659_v55  ;;  %v2665_v53 = vmul.f32 1.442695, %v2652_v11  ;;  %vm2694_vm11 = vcmp.ge.f32.partialorder %v5393_v39, 0.0 }
 0xdd6   : > { %v2569_v52 = vmul.f32 1.0614054, %v5397_v47  ;;  %v5405_v59 = vpop.eup %4089  ;;  %4105 = vpow2.f32 %v2657_v61  ;;  %v2718_v28 = vmul.f32 0.5, %v5389_v29  ;;  %v3483_v39 = vld [vmem:[%s887_s30] ss:$0 sm:$0xff] }
 0xdd7   : > { %v2575_v54 = vadd.f32 -1.4531521, %v2567_v48  ;;  %v2568_v46 = vmul.f32 1.0614054, %v5405_v59  ;;  %v5409_v2 = vpop.eup %4091  ;;  %4107 = vpow2.f32 %v2661_v0  ;;  %v2654_v0 = vmul.f32 %v2646_v41, %v5401_v50 }
 0xdd8   : > { %v2577_v20 = vadd.f32 -1.4531521, %v2569_v52  ;;  %v2570_v6 = vmul.f32 1.0614054, %v5409_v2  ;;  %v5415_v24 = vpop.eup %4093  ;;  %4109 = vpow2.f32 %v2663_v10 }
 0xdd9   : > { %v2583_v63 = vmul.f32 %v5395_v40, %v2575_v54  ;;  %v2576_v5 = vadd.f32 -1.4531521, %v2568_v46  ;;  %v5418_v32 = vpop.eup %4095  ;;  %v2571_v36 = vmul.f32 1.0614054, %v5415_v24  ;;  %4111 = vpow2.f32 %v2667_v26 }
 0xdda   : > { %v2585_v3 = vmul.f32 %v5397_v47, %v2577_v20  ;;  %v2578_v19 = vadd.f32 -1.4531521, %v2570_v6  ;;  %v2573_v38 = vmul.f32 1.0614054, %v5418_v32  ;;  %v5426_v49 = vpop.eup %4097  ;;  %4113 = vpow2.f32 %v2665_v53 }
 0xddb   : > { %v2591_v4 = vadd.f32 1.4214138, %v2583_v63  ;;  %v2584_v18 = vmul.f32 %v5405_v59, %v2576_v5  ;;  %v2579_v31 = vadd.f32 -1.4531521, %v2571_v36  ;;  %v4100_v61 = vpop.eup %4099  ;;  %v2572_v46 = vmul.f32 1.0614054, %v5426_v49 }
 0xddc   : > { %v2593_v9 = vadd.f32 1.4214138, %v2585_v3  ;;  %v2586_v35 = vmul.f32 %v5409_v2, %v2578_v19  ;;  %v2581_v52 = vadd.f32 -1.4531521, %v2573_v38 }
 0xddd   : > { %v2599_v14 = vmul.f32 %v5395_v40, %v2591_v4  ;;  %v2592_v34 = vadd.f32 1.4214138, %v2584_v18  ;;  %v2587_v20 = vmul.f32 %v5415_v24, %v2579_v31  ;;  %v2580_v10 = vadd.f32 -1.4531521, %v2572_v46 }
 0xdde   : > { %v2601_v30 = vmul.f32 %v5397_v47, %v2593_v9  ;;  %v2594_v48 = vadd.f32 1.4214138, %v2586_v35  ;;  %v2589_v63 = vmul.f32 %v5418_v32, %v2581_v52  ;;  %v5434_v1 = vpop.eup %4101  ;;  %v2669_v52 = vmul.f32 1.442695, %v2654_v0 }
 0xddf   : > { %v2607_v33 = vadd.f32 -0.28449672, %v2599_v14  ;;  %v2600_v43 = vmul.f32 %v5405_v59, %v2592_v34  ;;  %v2595_v4 = vadd.f32 1.4214138, %v2587_v20  ;;  %v4104_v5 = vpop.eup %4103  ;;  %v2574_v14 = vmul.f32 1.0614054, %v5434_v1 }
 0xde0   : > { %v2609_v37 = vadd.f32 -0.28449672, %v2601_v30  ;;  %v2602_v56 = vmul.f32 %v5409_v2, %v2594_v48  ;;  %v2597_v9 = vadd.f32 1.4214138, %v2589_v63  ;;  %v4106_v18 = vpop.eup %4105  ;;  %v2588_v34 = vmul.f32 %v5426_v49, %v2580_v10 }
 0xde1   : > { %v2615_v42 = vmul.f32 %v5395_v40, %v2607_v33  ;;  %v2608_v55 = vadd.f32 -0.28449672, %v2600_v43  ;;  %v2603_v26 = vmul.f32 %v5415_v24, %v2595_v4  ;;  %v4108_v11 = vpop.eup %4107  ;;  %v2582_v35 = vadd.f32 -1.4531521, %v2574_v14 }
 0xde2   : > { %v2617_v51 = vmul.f32 %v5397_v47, %v2609_v37  ;;  %v2610_v45 = vadd.f32 -0.28449672, %v2602_v56  ;;  %v2605_v33 = vmul.f32 %v5418_v32, %v2597_v9  ;;  %v4110_v38 = vpop.eup %4109  ;;  %v2711_v63 = vmul.f32 0.5, %v5348_v57 }
 0xde3   : > { %v2623_v54 = vadd.f32 0.2548296, %v2615_v42  ;;  %v2616_v44 = vmul.f32 %v5405_v59, %v2608_v55  ;;  %v2611_v37 = vadd.f32 -0.28449672, %v2603_v26  ;;  %v2596_v42 = vadd.f32 1.4214138, %v2588_v34 }
 0xde4   : > { %v2625_v23 = vadd.f32 0.2548296, %v2617_v51  ;;  %v2618_v50 = vmul.f32 %v5409_v2, %v2610_v45  ;;  %v2613_v41 = vadd.f32 -0.28449672, %v2605_v33  ;;  %v2590_v43 = vmul.f32 %v5434_v1, %v2582_v35 }
 0xde5   : > { %v2631_v3 = vmul.f32 %v5395_v40, %v2623_v54  ;;  %v2624_v30 = vadd.f32 0.2548296, %v2616_v44  ;;  %v2619_v51 = vmul.f32 %v5415_v24, %v2611_v37  ;;  %v4112_v54 = vpop.eup %4111  ;;  %v2604_v20 = vmul.f32 %v5426_v49, %v2596_v42 }
 0xde6   : > { %v2633_v6 = vmul.f32 %v5397_v47, %v2625_v23  ;;  %v2626_v36 = vadd.f32 0.2548296, %v2618_v50  ;;  %v2621_v56 = vmul.f32 %v5418_v32, %v2613_v41  ;;  %4115 = vpow2.f32 %v2669_v52 }
 0xde7   : > { %v2671_v19 = vmul.f32 %v4100_v61, %v2631_v3  ;;  %v2632_v47 = vmul.f32 %v5405_v59, %v2624_v30  ;;  %v2598_v59 = vadd.f32 1.4214138, %v2590_v43  ;;  %v2627_v23 = vadd.f32 0.2548296, %v2619_v51  ;;  %v4114_v30 = vpop.eup %4113 }
 0xde8   : > { %v2673_v40 = vmul.f32 %v4104_v5, %v2633_v6  ;;  %v2634_v61 = vmul.f32 %v5409_v2, %v2626_v36  ;;  %v2629_v53 = vadd.f32 0.2548296, %v2621_v56  ;;  %v2612_v46 = vadd.f32 -0.28449672, %v2604_v20 }
 0xde9   : > { %v2679_v48 = vsub.f32 1.0, %v2671_v19  ;;  %v2672_v55 = vmul.f32 %v4106_v18, %v2632_v47  ;;  %v2635_v45 = vmul.f32 %v5415_v24, %v2627_v23  ;;  %v2606_v6 = vmul.f32 %v5434_v1, %v2598_v59 }
 0xdea   : > { %v2681_v31 = vsub.f32 1.0, %v2673_v40  ;;  %v2637_v4 = vmul.f32 %v5418_v32, %v2629_v53  ;;  %v2620_v5 = vmul.f32 %v5426_v49, %v2612_v46  ;;  %v2713_v9 = vmul.f32 0.5, %v5350_v58 }
 0xdeb   : > { %v2695_v3 = vsub.f32 0.0, %v2679_v48  ;;  %v2680_v0 = vsub.f32 1.0, %v2672_v55  ;;  %v2712_v2 = vmul.f32 0.5, %v5352_v60  ;;  %v2674_v10 = vmul.f32 %v4108_v11, %v2634_v61 }
 0xdec   : > { %v2697_v44 = vsub.f32 0.0, %v2681_v31  ;;  %v2675_v57 = vmul.f32 %v4110_v38, %v2635_v45  ;;  %v2677_v14 = vmul.f32 %v4112_v54, %v2637_v4  ;;  %v2628_v18 = vadd.f32 0.2548296, %v2620_v5 }
 0xded   : > { %v2614_v19 = vadd.f32 -0.28449672, %v2606_v6  ;;  %v2703_v24 = vsel %vm2687_vm4, %v2679_v48, %v2695_v3  ;;  %v2696_v26 = vsub.f32 0.0, %v2680_v0  ;;  %v2682_v60 = vsub.f32 1.0, %v2674_v10 }
 0xdee   : > { %v2683_v32 = vsub.f32 1.0, %v2675_v57  ;;  %v2705_v50 = vsel %vm2689_vm5, %v2681_v31, %v2697_v44  ;;  %v2685_v40 = vsub.f32 1.0, %v2677_v14  ;;  %v2636_v58 = vmul.f32 %v5426_v49, %v2628_v18 }
 0xdef   : > { %v2715_v33 = vmul.f32 0.5, %v5372_v12  ;;  %v2622_v62 = vmul.f32 %v5434_v1, %v2614_v19  ;;  %v2719_v34 = vadd.f32 1.0, %v2703_v24  ;;  %v2721_v47 = vadd.f32 1.0, %v2705_v50 }
 0xdf0   : > { %v2699_v11 = vsub.f32 0.0, %v2683_v32  ;;  %v2701_v35 = vsub.f32 0.0, %v2685_v40  ;;  %v2676_v22 = vmul.f32 %v4114_v30, %v2636_v58  ;;  %v2704_v38 = vsel %vm2688_vm6, %v2680_v0, %v2696_v26  ;;  %v4116_v43 = vpop.eup %4115 }
 0xdf1   : > { %v2630_v37 = vadd.f32 0.2548296, %v2622_v62  ;;  %v2698_v12 = vsub.f32 0.0, %v2682_v60  ;;  %v2717_v48 = vmul.f32 0.5, %v5374_v13  ;;  %v2727_v51 = vmul.f32 %v2719_v34, %v2711_v63 }
 0xdf2   : > { %v2707_v36 = vsel %vm2691_vm7, %v2683_v32, %v2699_v11  ;;  %v2709_v41 = vsel %vm2693_vm8, %v2685_v40, %v2701_v35  ;;  %v2684_v42 = vsub.f32 1.0, %v2676_v22  ;;  %v2729_v17 = vmul.f32 %v2721_v47, %v2713_v9 }
 0xdf3   : > { %v2723_v49 = vadd.f32 1.0, %v2707_v36  ;;  %v2725_v31 = vadd.f32 1.0, %v2709_v41  ;;  %v2638_v15 = vmul.f32 %v5434_v1, %v2630_v37  ;;  %v2720_v55 = vadd.f32 1.0, %v2704_v38 }
 0xdf4   : > { %v2700_v54 = vsub.f32 0.0, %v2684_v42  ;;  %v2716_v61 = vmul.f32 0.5, %v5379_v16  ;;  %v2706_v23 = vsel %vm2690_vm10, %v2682_v60, %v2698_v12  ;;  %v2714_v0 = vmul.f32 0.5, %v5354_v27 }
 0xdf5   : > { %v2731_v52 = vmul.f32 %v2723_v49, %v2715_v33  ;;  %v2733_v56 = vmul.f32 %v2725_v31, %v2717_v48  ;;  %v2678_v25 = vmul.f32 %v4116_v43, %v2638_v15  ;;  %v2728_v1 = vmul.f32 %v2720_v55, %v2712_v2 }
 0xdf6   : > { %v2708_v59 = vsel %vm2692_vm9, %v2684_v42, %v2700_v54  ;;  %v2722_v44 = vadd.f32 1.0, %v2706_v23 }
 0xdf7   : > { %v2735_v20 = vpack.c.bf16 %v2731_v52, %v2727_v51  ;;  %v2737_v13 = vpack.c.bf16 %v2733_v56, %v2729_v17  ;;  %v2724_v53 = vadd.f32 1.0, %v2708_v59  ;;  %v2686_v46 = vsub.f32 1.0, %v2678_v25 }
 0xdf8   : > { %v2730_v16 = vmul.f32 %v2722_v44, %v2714_v0 }
 0xdf9   : > { %v2732_v63 = vmul.f32 %v2724_v53, %v2716_v61  ;;  %v2702_v3 = vsub.f32 0.0, %v2686_v46 }
 0xdfb   : > { %v2710_v21 = vsel %vm2694_vm11, %v2686_v46, %v2702_v3  ;;  %v2736_v45 = vpack.c.bf16 %v2732_v63, %v2728_v1 }
 0xdfc   : > { %v2726_v4 = vadd.f32 1.0, %v2710_v21 }
 0xdfd   : > { %3034 = vmatprep.mubr.bf16.mxu0 %v2736_v45 }
 0xdfe   : > { %v2734_v5 = vmul.f32 %v2726_v4, %v2718_v28  ;;  %3035 = vmatmul.mubr.bf16.vlgmr.msra.gmra.mrb[24].mxu0 %v2735_v20 }
 0xe00   : > { %v2738_v6 = vpack.c.bf16 %v2734_v5, %v2730_v16 }
 0xe02   : > { %3075 = vmatprep.mubr.bf16.mxu1 %v2738_v6 }
 0xe03   : > { %3076 = vmatmul.mubr.bf16.vlgmr.msra.gmra.mrb[36].mxu1 %v2737_v13 }
 0xed1   : > { %v3573_v9 = vpop.f32.mrb[24].mxu0 }
 0xed2   : > { %v3574_v2 = vpop.f32.mrb[25].mxu0 }
 0xed3   : > { %v3575_v10 = vadd.f32 %v3574_v2, %v3573_v9  ;;  %v3576_v57 = vpop.f32.mrb[26].mxu0 }
 0xed4   : > { %v3577_v27 = vpop.f32.mrb[27].mxu0 }
 0xed5   : > { %v3578_v29 = vadd.f32 %v3577_v27, %v3576_v57  ;;  %v3037_v18 = vadd.f32 %v3575_v10, %v3483_v39 }
 0xed6   : > { %v3595_v14 = vpop.f32.mrb[36].mxu1 }
 0xed7   : > { %v3596_v19 = vpop.f32.mrb[37].mxu1  ;;  %v3040_v30 = vadd.f32 %v3578_v29, %v3483_v39 }
 0xed8   : > { %v3597_v24 = vadd.f32 %v3596_v19, %v3595_v14  ;;  %v3598_v32 = vpop.f32.mrb[38].mxu1 }
 0xed9   : > { %v3599_v50 = vpop.f32.mrb[39].mxu1 }
 0xeda   : > { %v3078_v26 = vadd.f32 %v3597_v24, %v3037_v18  ;;  %v3600_v40 = vadd.f32 %v3599_v50, %v3598_v32 }
 0xedc   : > { %v3084_v58 = vadd.f32 %v3078_v26, %v5247_v7  ;;  %v3081_v60 = vadd.f32 %v3600_v40, %v3040_v30 }
 0xede   : > { %3086 = vst [vmem:[#allocation17] sm:$0xff] %v3084_v58  ;;  %v3085_v11 = vadd.f32 %v3081_v60, %v5250_v8 }
 0xee0   : > { %3087 = vst [vmem:[#allocation17 + $0x8] sm:$0xff] %v3085_v11 }
 0xee1   : > { %4420 = shalt.err (!%p4417_p11)
}
 0xee2   : > { %s5645_s17 = sld [smem:[#allocation45_spill]] }
 0xee8   : > { %s4421_s4 = scalar_lea.hbm %s5645_s17, 256 }
 0xee9   : > { %p4422_p10 = scmp.ne.s32.totalorder %s5645_s17, %s4421_s4  ;;  %p4427_p3 = scmp.lt.u32.totalorder %s4421_s4, %s5645_s17 }
 0xeeb   : > { %p4423_p0 = pnand %p4422_p10, %p3834_p13 }
 0xeed   : > { %p4424_p5 = pneg %p4423_p0 }
 0xeef   : > { %p4429_p9 = pnand %p4427_p3, %p4424_p5 }
 0xef1   : > { %4432 = shalt.err (!%p4429_p9)
}
 0xef2   : > { %s4512_s10 = smov 128   ;;  %s4513_s13 = smov 8  }
 0xef3   : > { %3786 = dma.vmem_to_hbm [thread:$0]  (%p3834_p13), %s3095_s29, 256, %s5645_s17, [#allocation4], %s4512_s10, %s4512_s10, %s4513_s13  }
 0xef4   : > { %4470 = dma.done.wait (%p3834_p13), [#allocation4], 256  }
 0xef5   : > { %4472 = vsyncadd (%p3834_p13), [#allocation4], 4294967040 }
 0xef6 PF: > { %s5646_s30 = sld [smem:[#allocation25_spill]]  ;;  %s5647_s18 = sld [smem:[#allocation24_spill]] }
 0xef7   : > { %s5648_s29 = sld [smem:[#allocation26_spill]]  ;;  %s5649_s27 = smov %s4479_s28 }
 0xefc   : > { %p30_p6 = scmp.ge.s32.totalorder %s5646_s30, 4   ;;  %s5650_s28 = smov %s5647_s18 }
 0xefe   :  { %32 = sbr.rel (!%p30_p6) target bundleno = 25 (0x19), region = 213 }
 0xf05   :  { %3110 = vsyncpa [#allocation3], 1 }
 0xf06   :  { %3112 = vsyncpa [#allocation3 + $0x1], 1 }
 0xf07   :  { %3113 = vsyncpa [#allocation6], 1 }
 0xf08   :  { %3114 = vsyncpa [#allocation9], 1 }
 0xf09   :  { %3115 = vsyncpa [#allocation12], 1 }
 0xf0a   :  { %3116 = vsyncpa [#allocation4], 1 }
 0xf0b   :  { %3118 = vsyncpa [#allocation4 + $0x1], 1 }

</bundles_post_ra>
